<compile_context>
chip_gen: v7x
topology: tpu7x:2x2x1
jax: 0.10.0
libtpu: 0.0.40
codegen_flags: <defaults>
</compile_context>

<pallas_src>
import functools
import math

import jax
import jax.numpy as jnp
from jax.experimental import pallas as pl
from jax.experimental.pallas import tpu as pltpu


_VMEM_LIMIT = 48 * 1024 * 1024   # explicit: safe on v5e/v6e (128 MiB) and v7x (64 MiB)


def _choose_slab_block(bt, cap=8):
    """Pick a slab block size <= cap; pad bt instead of collapsing the grid,
    and keep the grid length >= 2 when possible (v7x megacore)."""
    if bt <= 1:
        return 1, max(bt, 1)
    n_steps = max(2, -(-bt // cap))
    blk = -(-bt // n_steps)
    return blk, n_steps * blk


# -----------------------------------------------------------------------------
# Kernel A: x_ + Q/K/V projection + GAT-style sampled scoring  (per bt-slab)
# -----------------------------------------------------------------------------
def _proj_gat_kernel(x_ref, eig_ref, wq_ref, bq_ref, wk_ref, bk_ref,
                     wv_ref, bv_ref, wadj_ref, wp_ref,
                     q_ref, k_ref, v_ref, m_ref, *, mxu_dtype):
    blk, n, d = x_ref.shape

    x_ = x_ref[...] + eig_ref[...]                         # (blk, N, D)
    x2 = (x_.reshape(blk * n, d)).astype(mxu_dtype)

    def _proj(w_ref, b_ref):
        acc = jnp.dot(x2, w_ref[...].astype(mxu_dtype),
                      preferred_element_type=jnp.float32) + b_ref[...]
        return acc.reshape(blk, n, d)

    q = _proj(wq_ref, bq_ref)
    k = _proj(wk_ref, bk_ref)
    v = _proj(wv_ref, bv_ref)
    q_ref[...] = q.astype(q_ref.dtype)
    k_ref[...] = k.astype(k_ref.dtype)
    v_ref[...] = v.astype(v_ref.dtype)

    # GAT sampled scoring without gathers:
    #   M[n] = (sum_m W_adj[n,m] * (Q[n].K[m]) * V[m]) . w_p
    s_full = jnp.einsum("bnd,bmd->bnm", q, k,
                        preferred_element_type=jnp.float32)        # (blk,N,N)
    gat = jnp.einsum("bnm,bmd->bnd", wadj_ref[...] * s_full, v,
                     preferred_element_type=jnp.float32)           # (blk,N,D)
    m_ref[...] = jnp.sum(gat * wp_ref[...], axis=-1,
                         keepdims=True).astype(m_ref.dtype)        # (blk,N,1)


def _proj_gat(x_bt, eig_nd, wq, bq, wk, bk, wv, bv, wadj, wp, *,
              mxu_dtype, bt_cap=8):
    bt, n, d = x_bt.shape
    blk, bt_pad = _choose_slab_block(bt, bt_cap)
    if bt_pad != bt:
        x_bt = jnp.pad(x_bt, ((0, bt_pad - bt), (0, 0), (0, 0)))

    slab = pl.BlockSpec((blk, n, d), lambda i: (i, 0, 0))
    mat = pl.BlockSpec((d, d), lambda i: (0, 0))
    vec = pl.BlockSpec((1, d), lambda i: (0, 0))

    flops = int(bt_pad * (6 * n * d * d + 4 * n * n * d + n * n + 2 * n * d))
    bytes_acc = int(4 * (4 * bt_pad * n * d + bt_pad * n
                         + n * d + 3 * d * d + 3 * d + n * n + d))

    q, k, v, m = pl.pallas_call(
        functools.partial(_proj_gat_kernel, mxu_dtype=mxu_dtype),
        out_shape=(
            jax.ShapeDtypeStruct((bt_pad, n, d), x_bt.dtype),
            jax.ShapeDtypeStruct((bt_pad, n, d), x_bt.dtype),
            jax.ShapeDtypeStruct((bt_pad, n, d), x_bt.dtype),
            jax.ShapeDtypeStruct((bt_pad, n, 1), jnp.float32),
        ),
        grid=(bt_pad // blk,),
        in_specs=[slab,
                  pl.BlockSpec((n, d), lambda i: (0, 0)),
                  mat, vec, mat, vec, mat, vec,
                  pl.BlockSpec((n, n), lambda i: (0, 0)),
                  pl.BlockSpec((1, 1, d), lambda i: (0, 0, 0))],
        out_specs=(slab, slab, slab,
                   pl.BlockSpec((blk, n, 1), lambda i: (i, 0, 0))),
        compiler_params=pltpu.CompilerParams(
            dimension_semantics=("parallel",),
            vmem_limit_bytes=_VMEM_LIMIT),
        cost_estimate=pl.CostEstimate(flops=flops, transcendentals=0,
                                      bytes_accessed=bytes_acc),
    )(x_bt, eig_nd, wq, bq.reshape(1, d), wk, bk.reshape(1, d),
      wv, bv.reshape(1, d), wadj, wp.reshape(1, 1, d))
    return q[:bt], k[:bt], v[:bt], m[:bt, :, 0]


# -----------------------------------------------------------------------------
# Kernel B: sparse attention core + ofc + residual + LN + FeedForward (fused)
# -----------------------------------------------------------------------------
def _attn_ofc_ff_kernel(qr_ref, k_ref, v_ref, x_ref, eig_ref,
                        wo_ref, bo_ref, w1_ref, b1_ref, w2_ref, b2_ref,
                        o_ref, *, scale, eps, mxu_dtype):
    blk, n, d = k_ref.shape
    s = qr_ref.shape[1]

    def _ln(t):
        mu = jnp.mean(t, axis=-1, keepdims=True)
        c = t - mu
        var = jnp.mean(c * c, axis=-1, keepdims=True)
        return c * jax.lax.rsqrt(var + eps)

    q_red = qr_ref[...]                                         # (blk, S, D)
    k = k_ref[...]
    v = v_ref[...]

    scores = jnp.einsum("bsd,bnd->bsn", q_red, k,
                        preferred_element_type=jnp.float32) * scale
    mrow = jnp.max(scores, axis=-1, keepdims=True)
    p = jnp.exp(scores - mrow)
    l = jnp.sum(p, axis=-1, keepdims=True)
    inv_l = 1.0 / l                    # only blk*S divides, then a broadcast mul
    attn = p * inv_l                                            # (blk, S, N)
    out = jnp.einsum("bsn,bnd->bsd", attn, v,
                     preferred_element_type=jnp.float32)        # (blk, S, D)

    # cp[n] = first argmax over S of attn[:, :, n]   (torch.argmax semantics)
    col_max = jnp.max(attn, axis=1, keepdims=True)              # (blk, 1, N)
    iota_s = jax.lax.broadcasted_iota(jnp.int32, attn.shape, 1)
    cp = jnp.min(jnp.where(attn == col_max, iota_s, s), axis=1)  # (blk, N)

    # value[n] = out[cp[n]]  (cp is kernel-internal -> small one-hot on MXU)
    iota_s2 = jax.lax.broadcasted_iota(jnp.int32, (blk, n, s), 2)
    onehot_cp = (cp[:, :, None] == iota_s2).astype(jnp.float32)
    value = jnp.einsum("bns,bsd->bnd", onehot_cp, out,
                       preferred_element_type=jnp.float32)      # (blk, N, D)

    # ofc(value) + x_ -> LN -> FeedForward([D,D,D], res_ln=True)
    x_ = x_ref[...] + eig_ref[...]
    v2 = value.reshape(blk * n, d)
    x2 = x_.reshape(blk * n, d)

    def _mm(a, w_ref, b_ref):
        return jnp.dot(a.astype(mxu_dtype), w_ref[...].astype(mxu_dtype),
                       preferred_element_type=jnp.float32) + b_ref[...]

    h0 = _ln(_mm(v2, wo_ref, bo_ref) + x2)
    h1 = jnp.maximum(_mm(h0, w1_ref, b1_ref), 0.0)
    h2 = _mm(h1, w2_ref, b2_ref)
    o_ref[...] = _ln(h2 + h0).reshape(blk, n, d).astype(o_ref.dtype)


def _attn_ofc_ff(q_red, k, v, x_bt, eig_nd, wo, bo, w1, b1, w2, b2, *,
                 hidden_size, mxu_dtype, eps=1e-5, bt_cap=8):
    bt, n, d = k.shape
    s = q_red.shape[1]
    blk, bt_pad = _choose_slab_block(bt, bt_cap)
    if bt_pad != bt:
        pad3 = ((0, bt_pad - bt), (0, 0), (0, 0))
        q_red = jnp.pad(q_red, pad3)
        k = jnp.pad(k, pad3)
        v = jnp.pad(v, pad3)
        x_bt = jnp.pad(x_bt, pad3)

    slab = pl.BlockSpec((blk, n, d), lambda i: (i, 0, 0))
    mat = pl.BlockSpec((d, d), lambda i: (0, 0))
    vec = pl.BlockSpec((1, d), lambda i: (0, 0))

    flops = int(bt_pad * (4 * s * n * d + 2 * n * s * d + 6 * n * d * d
                          + 16 * n * d + 4 * s * n))
    bytes_acc = int(4 * (bt_pad * s * d + 4 * bt_pad * n * d
                         + n * d + 3 * d * d + 3 * d))

    out = pl.pallas_call(
        functools.partial(_attn_ofc_ff_kernel,
                          scale=1.0 / math.sqrt(hidden_size),
                          eps=eps, mxu_dtype=mxu_dtype),
        out_shape=jax.ShapeDtypeStruct((bt_pad, n, d), x_bt.dtype),
        grid=(bt_pad // blk,),
        in_specs=[pl.BlockSpec((blk, s, d), lambda i: (i, 0, 0)),
                  slab, slab, slab,
                  pl.BlockSpec((n, d), lambda i: (0, 0)),
                  mat, vec, mat, vec, mat, vec],
        out_specs=slab,
        compiler_params=pltpu.CompilerParams(
            dimension_semantics=("parallel",),
            vmem_limit_bytes=_VMEM_LIMIT),
        cost_estimate=pl.CostEstimate(flops=flops,
                                      transcendentals=int(bt_pad * s * n),
                                      bytes_accessed=bytes_acc),
    )(q_red, k, v, x_bt, eig_nd, wo, bo.reshape(1, d), w1, b1.reshape(1, d),
      w2, b2.reshape(1, d))
    return out[:bt]


# -----------------------------------------------------------------------------
# Full forward (two Pallas kernels + small XLA glue for top-k / Q_reduce gather)
# -----------------------------------------------------------------------------
def sparse_spatial_attention_forward(x, adj, eigvec, eigvalue, params,
                                     log_samples, mxu_dtype=None):
    b, t, n, d = x.shape
    bt = b * t
    mxu_dtype = jnp.float32 if mxu_dtype is None else mxu_dtype

    # eig term of x_ = x + eigvec.T.squeeze(-1) @ diag(eigvalue)  (added in-kernel)
    eig_nd = jnp.squeeze(jnp.swapaxes(eigvec, 0, 1), -1) * eigvalue[None, :]

    # adjacency multiplicity matrix: W[n, m] = #{j : adj[n, j] == m}
    wadj = jnp.sum(adj[:, :, None] == jnp.arange(n)[None, None, :],
                   axis=1).astype(x.dtype)

    x_bt = x.reshape(bt, n, d)
    q, k, v, m_score = _proj_gat(
        x_bt, eig_nd, params["wq"], params["bq"], params["wk"], params["bk"],
        params["wv"], params["bv"], wadj, params["wp"], mxu_dtype=mxu_dtype)
    m_score = m_score + params["bp"]

    # TODO(synk): top-k selection has no clean Pallas equivalent; it and the
    # tiny (bt,S,D) Q_reduce gather stay in XLA.
    samples = int(log_samples * math.log2(n))
    _, m_top = jax.lax.top_k(m_score, samples)                        # (bt, S)
    q_red = jnp.take_along_axis(q, m_top[:, :, None], axis=1)         # (bt, S, D)

    out = _attn_ofc_ff(q_red, k, v, x_bt, eig_nd,
                       params["wo"], params["bo"], params["w1"], params["b1"],
                       params["w2"], params["b2"],
                       hidden_size=d, mxu_dtype=mxu_dtype)
    return out.reshape(b, t, n, d)


# -----------------------------------------------------------------------------
# Pure-JAX reference (mirrors the PyTorch module exactly, gather-based)
# -----------------------------------------------------------------------------
def _layernorm_ref(t, eps=1e-5):
    mu = jnp.mean(t, axis=-1, keepdims=True)
    c = t - mu
    var = jnp.mean(c * c, axis=-1, keepdims=True)
    return c / jnp.sqrt(var + eps)


def _reference_forward(x, adj, eigvec, eigvalue, params, log_samples):
    b, t, n, d = x.shape
    eig_mat = jnp.squeeze(jnp.swapaxes(eigvec, 0, 1), -1)
    x_ = x + eig_mat * eigvalue[None, :]

    q = x_ @ params["wq"] + params["bq"]
    k = x_ @ params["wk"] + params["bk"]
    v = x_ @ params["wv"] + params["bv"]

    k_sample = jnp.take(k, adj, axis=2)
    v_sample = jnp.take(v, adj, axis=2)
    qk_sample = jnp.einsum("btnd,btnkd->btnk", q, k_sample)
    gat = jnp.einsum("btnk,btnkd->btnd", qk_sample, v_sample)
    m_score = jnp.einsum("btnd,d->btn", gat, params["wp"]) + params["bp"]
    samples = int(log_samples * math.log2(n))
    _, m_top = jax.lax.top_k(m_score, samples)

    bidx = jnp.arange(b)[:, None, None]
    tidx = jnp.arange(t)[None, :, None]
    q_reduce = q[bidx, tidx, m_top, :]                          # (B,T,S,D)
    scores = jnp.einsum("btsd,btnd->btsn", q_reduce, k) / math.sqrt(d)
    attn = jax.nn.softmax(scores, axis=-1)
    cp = jnp.argmax(attn, axis=-2)                              # (B,T,N)
    out = jnp.einsum("btsn,btnd->btsd", attn, v)                # (B,T,S,D)
    value = out[bidx, tidx, cp, :]                              # (B,T,N,D)

    value = value @ params["wo"] + params["bo"] + x_
    value = _layernorm_ref(value)
    h = jax.nn.relu(value @ params["w1"] + params["b1"]) @ params["w2"] + params["b2"]
    return _layernorm_ref(h + value)


if __name__ == "__main__":
    key = jax.random.PRNGKey(0)
    B, T, N, D = 2, 4, 16, 32          # [B,T,N,D] as in the module docstring
    K_NEIGH = 4
    LOG_SAMPLES = 2                    # samples = int(2 * log2(16)) = 8

    keys = jax.random.split(key, 12)
    x = jax.random.normal(keys[0], (B, T, N, D), dtype=jnp.float32)
    eigvec = jax.random.normal(keys[1], (D, N, 1), dtype=jnp.float32)
    eigvalue = jax.random.normal(keys[2], (D,), dtype=jnp.float32)
    adj = jax.random.randint(keys[3], (N, K_NEIGH), 0, N, dtype=jnp.int32)

    scale = 1.0 / math.sqrt(D)

    def _linear(kk):
        kw, kb = jax.random.split(kk)
        return (jax.random.normal(kw, (D, D), jnp.float32) * scale,
                jax.random.normal(kb, (D,), jnp.float32) * scale)

    wq, bq = _linear(keys[4])
    wk, bk = _linear(keys[5])
    wv, bv = _linear(keys[6])
    wo, bo = _linear(keys[7])
    w1, b1 = _linear(keys[8])
    w2, b2 = _linear(keys[9])
    wp = jax.random.normal(keys[10], (D,), jnp.float32) * scale
    bp = jax.random.normal(keys[11], (), jnp.float32) * scale

    params = dict(wq=wq, bq=bq, wk=wk, bk=bk, wv=wv, bv=bv, wo=wo, bo=bo,
                  w1=w1, b1=b1, w2=w2, b2=b2, wp=wp, bp=bp)

    fwd = jax.jit(sparse_spatial_attention_forward,
                  static_argnames=("log_samples", "mxu_dtype"))

    # f32 MXU path: exact parity with the reference (argmax / top-k indices).
    out = fwd(x, adj, eigvec, eigvalue, params, log_samples=LOG_SAMPLES)
    out = jax.block_until_ready(out)

    ref = _reference_forward(x, adj, eigvec, eigvalue, params, LOG_SAMPLES)
    assert out.shape == (B, T, N, D), out.shape
    assert bool(jnp.isfinite(out).all())
    max_err = float(jnp.max(jnp.abs(out - ref)))
    assert max_err < 1e-3, f"max abs err {max_err}"

    # Optional bf16 MXU operands (f32 accumulation) -- sanity-run only, since
    # near-tie argmax/top-k indices may legitimately differ from f32.
    out_bf16 = fwd(x, adj, eigvec, eigvalue, params,
                   log_samples=LOG_SAMPLES, mxu_dtype=jnp.bfloat16)
    out_bf16 = jax.block_until_ready(out_bf16)
    assert out_bf16.shape == (B, T, N, D)
    assert bool(jnp.isfinite(out_bf16).all())

    print("KERNEL_OK")
</pallas_src>

<mosaic_0001>
module attributes {stable_mosaic.version = 11 : i64} {
  func.func @_proj_gat_kernel(%arg0: i32, %arg1: memref<4x16x32xf32, #tpu.memory_space<vmem>>, %arg2: memref<16x32xf32, #tpu.memory_space<vmem>>, %arg3: memref<32x32xf32, #tpu.memory_space<vmem>>, %arg4: memref<1x32xf32, #tpu.memory_space<vmem>>, %arg5: memref<32x32xf32, #tpu.memory_space<vmem>>, %arg6: memref<1x32xf32, #tpu.memory_space<vmem>>, %arg7: memref<32x32xf32, #tpu.memory_space<vmem>>, %arg8: memref<1x32xf32, #tpu.memory_space<vmem>>, %arg9: memref<16x16xf32, #tpu.memory_space<vmem>>, %arg10: memref<1x1x32xf32, #tpu.memory_space<vmem>>, %arg11: memref<4x16x32xf32, #tpu.memory_space<vmem>>, %arg12: memref<4x16x32xf32, #tpu.memory_space<vmem>>, %arg13: memref<4x16x32xf32, #tpu.memory_space<vmem>>, %arg14: memref<4x16x1xf32, #tpu.memory_space<vmem>>) attributes {dimension_semantics = [#tpu.dimension_semantics<parallel>], iteration_bounds = array<i64: 2>, scalar_prefetch = 0 : i64, scratch_operands = 0 : i64, tpu.core_type = #tpu.core_type<tc>, window_params = [{transform_indices = @transform_0, window_bounds = array<i64: 4, 16, 32>}, {pipeline_mode = #tpu.pipeline_mode<synchronous>, transform_indices = @transform_1, window_bounds = array<i64: 16, 32>}, {pipeline_mode = #tpu.pipeline_mode<synchronous>, transform_indices = @transform_2, window_bounds = array<i64: 32, 32>}, {pipeline_mode = #tpu.pipeline_mode<synchronous>, transform_indices = @transform_3, window_bounds = array<i64: 1, 32>}, {pipeline_mode = #tpu.pipeline_mode<synchronous>, transform_indices = @transform_4, window_bounds = array<i64: 32, 32>}, {pipeline_mode = #tpu.pipeline_mode<synchronous>, transform_indices = @transform_5, window_bounds = array<i64: 1, 32>}, {pipeline_mode = #tpu.pipeline_mode<synchronous>, transform_indices = @transform_6, window_bounds = array<i64: 32, 32>}, {pipeline_mode = #tpu.pipeline_mode<synchronous>, transform_indices = @transform_7, window_bounds = array<i64: 1, 32>}, {pipeline_mode = #tpu.pipeline_mode<synchronous>, transform_indices = @transform_8, window_bounds = array<i64: 16, 16>}, {pipeline_mode = #tpu.pipeline_mode<synchronous>, transform_indices = @transform_9, window_bounds = array<i64: 1, 1, 32>}, {transform_indices = @transform_10, window_bounds = array<i64: 4, 16, 32>}, {transform_indices = @transform_11, window_bounds = array<i64: 4, 16, 32>}, {transform_indices = @transform_12, window_bounds = array<i64: 4, 16, 32>}, {transform_indices = @transform_13, window_bounds = array<i64: 4, 16, 1>}]} {
    %c0 = arith.constant 0 : index
    %c0_0 = arith.constant 0 : index
    %c0_1 = arith.constant 0 : index
    %0 = vector.load %arg1[%c0, %c0_0, %c0_1] : memref<4x16x32xf32, #tpu.memory_space<vmem>>, vector<4x16x32xf32>
    %c0_2 = arith.constant 0 : index
    %c0_3 = arith.constant 0 : index
    %1 = vector.load %arg2[%c0_2, %c0_3] : memref<16x32xf32, #tpu.memory_space<vmem>>, vector<16x32xf32>
    %2 = vector.shape_cast %1 : vector<16x32xf32> to vector<1x16x32xf32>
    %3 = vector.broadcast %2 : vector<1x16x32xf32> to vector<4x16x32xf32>
    %4 = arith.addf %0, %3 : vector<4x16x32xf32>
    %5 = vector.shape_cast %4 : vector<4x16x32xf32> to vector<64x32xf32>
    %c0_4 = arith.constant 0 : index
    %c0_5 = arith.constant 0 : index
    %6 = vector.load %arg3[%c0_4, %c0_5] : memref<32x32xf32, #tpu.memory_space<vmem>>, vector<32x32xf32>
    %cst = arith.constant dense<0.000000e+00> : vector<64x32xf32>
    %7 = tpu.matmul %5, %6, %cst {dimension_numbers = #tpu.dot_dimension_numbers<[1], [0], [0], [1], [0, 0, 1, 1], [], []>} : vector<64x32xf32>, vector<32x32xf32>, vector<64x32xf32> -> vector<64x32xf32>
    %c0_6 = arith.constant 0 : index
    %c0_7 = arith.constant 0 : index
    %8 = vector.load %arg4[%c0_6, %c0_7] : memref<1x32xf32, #tpu.memory_space<vmem>>, vector<1x32xf32>
    %9 = vector.broadcast %8 : vector<1x32xf32> to vector<64x32xf32>
    %10 = arith.addf %7, %9 : vector<64x32xf32>
    %11 = vector.shape_cast %10 : vector<64x32xf32> to vector<4x16x32xf32>
    %c0_8 = arith.constant 0 : index
    %c0_9 = arith.constant 0 : index
    %12 = vector.load %arg5[%c0_8, %c0_9] : memref<32x32xf32, #tpu.memory_space<vmem>>, vector<32x32xf32>
    %cst_10 = arith.constant dense<0.000000e+00> : vector<64x32xf32>
    %13 = tpu.matmul %5, %12, %cst_10 {dimension_numbers = #tpu.dot_dimension_numbers<[1], [0], [0], [1], [0, 0, 1, 1], [], []>} : vector<64x32xf32>, vector<32x32xf32>, vector<64x32xf32> -> vector<64x32xf32>
    %c0_11 = arith.constant 0 : index
    %c0_12 = arith.constant 0 : index
    %14 = vector.load %arg6[%c0_11, %c0_12] : memref<1x32xf32, #tpu.memory_space<vmem>>, vector<1x32xf32>
    %15 = vector.broadcast %14 : vector<1x32xf32> to vector<64x32xf32>
    %16 = arith.addf %13, %15 : vector<64x32xf32>
    %17 = vector.shape_cast %16 : vector<64x32xf32> to vector<4x16x32xf32>
    %c0_13 = arith.constant 0 : index
    %c0_14 = arith.constant 0 : index
    %18 = vector.load %arg7[%c0_13, %c0_14] : memref<32x32xf32, #tpu.memory_space<vmem>>, vector<32x32xf32>
    %cst_15 = arith.constant dense<0.000000e+00> : vector<64x32xf32>
    %19 = tpu.matmul %5, %18, %cst_15 {dimension_numbers = #tpu.dot_dimension_numbers<[1], [0], [0], [1], [0, 0, 1, 1], [], []>} : vector<64x32xf32>, vector<32x32xf32>, vector<64x32xf32> -> vector<64x32xf32>
    %c0_16 = arith.constant 0 : index
    %c0_17 = arith.constant 0 : index
    %20 = vector.load %arg8[%c0_16, %c0_17] : memref<1x32xf32, #tpu.memory_space<vmem>>, vector<1x32xf32>
    %21 = vector.broadcast %20 : vector<1x32xf32> to vector<64x32xf32>
    %22 = arith.addf %19, %21 : vector<64x32xf32>
    %23 = vector.shape_cast %22 : vector<64x32xf32> to vector<4x16x32xf32>
    %c0_18 = arith.constant 0 : index
    %c0_19 = arith.constant 0 : index
    %c0_20 = arith.constant 0 : index
    %24 = vector.load %arg11[%c0_18, %c0_19, %c0_20] : memref<4x16x32xf32, #tpu.memory_space<vmem>>, vector<4x16x32xf32>
    tpu.vector_store %arg11[%c0_18, %c0_19, %c0_20], %11 {strides = array<i32>} : memref<4x16x32xf32, #tpu.memory_space<vmem>>, vector<4x16x32xf32>,
    %c0_21 = arith.constant 0 : index
    %c0_22 = arith.constant 0 : index
    %c0_23 = arith.constant 0 : index
    %25 = vector.load %arg12[%c0_21, %c0_22, %c0_23] : memref<4x16x32xf32, #tpu.memory_space<vmem>>, vector<4x16x32xf32>
    tpu.vector_store %arg12[%c0_21, %c0_22, %c0_23], %17 {strides = array<i32>} : memref<4x16x32xf32, #tpu.memory_space<vmem>>, vector<4x16x32xf32>,
    %c0_24 = arith.constant 0 : index
    %c0_25 = arith.constant 0 : index
    %c0_26 = arith.constant 0 : index
    %26 = vector.load %arg13[%c0_24, %c0_25, %c0_26] : memref<4x16x32xf32, #tpu.memory_space<vmem>>, vector<4x16x32xf32>
    tpu.vector_store %arg13[%c0_24, %c0_25, %c0_26], %23 {strides = array<i32>} : memref<4x16x32xf32, #tpu.memory_space<vmem>>, vector<4x16x32xf32>,
    "tpu.trace_start"() <{level = 10 : i32, message = "bnd,bmd->bnm"}> : () -> ()
    %cst_27 = arith.constant dense<0.000000e+00> : vector<4x16x16xf32>
    %27 = tpu.matmul %11, %17, %cst_27 {dimension_numbers = #tpu.dot_dimension_numbers<[2], [2], [1], [1], [0, 0, 0, 1, 1, 1], [0], [0]>} : vector<4x16x32xf32>, vector<4x16x32xf32>, vector<4x16x16xf32> -> vector<4x16x16xf32>
    "tpu.trace_stop"() : () -> ()
    %c0_28 = arith.constant 0 : index
    %c0_29 = arith.constant 0 : index
    %28 = vector.load %arg9[%c0_28, %c0_29] : memref<16x16xf32, #tpu.memory_space<vmem>>, vector<16x16xf32>
    %29 = vector.shape_cast %28 : vector<16x16xf32> to vector<1x16x16xf32>
    %30 = vector.broadcast %29 : vector<1x16x16xf32> to vector<4x16x16xf32>
    %31 = arith.mulf %30, %27 : vector<4x16x16xf32>
    "tpu.trace_start"() <{level = 10 : i32, message = "bnm,bmd->bnd"}> : () -> ()
    %cst_30 = arith.constant dense<0.000000e+00> : vector<4x16x32xf32>
    %32 = tpu.matmul %31, %23, %cst_30 {dimension_numbers = #tpu.dot_dimension_numbers<[2], [1], [1], [2], [0, 0, 0, 1, 1, 2], [0], [0]>} : vector<4x16x16xf32>, vector<4x16x32xf32>, vector<4x16x32xf32> -> vector<4x16x32xf32>
    "tpu.trace_stop"() : () -> ()
    %c0_31 = arith.constant 0 : index
    %c0_32 = arith.constant 0 : index
    %c0_33 = arith.constant 0 : index
    %33 = vector.load %arg10[%c0_31, %c0_32, %c0_33] : memref<1x1x32xf32, #tpu.memory_space<vmem>>, vector<1x1x32xf32>
    %34 = vector.broadcast %33 : vector<1x1x32xf32> to vector<4x16x32xf32>
    %35 = arith.mulf %32, %34 : vector<4x16x32xf32>
    %cst_34 = arith.constant dense<0.000000e+00> : vector<4x16xf32>
    %36 = vector.multi_reduction <add>, %35, %cst_34 [2] : vector<4x16x32xf32> to vector<4x16xf32>
    %37 = vector.shape_cast %36 : vector<4x16xf32> to vector<4x16x1xf32>
    %c0_35 = arith.constant 0 : index
    %c0_36 = arith.constant 0 : index
    %c0_37 = arith.constant 0 : index
    %38 = vector.load %arg14[%c0_35, %c0_36, %c0_37] : memref<4x16x1xf32, #tpu.memory_space<vmem>>, vector<4x16x1xf32>
    tpu.vector_store %arg14[%c0_35, %c0_36, %c0_37], %37 {strides = array<i32>} : memref<4x16x1xf32, #tpu.memory_space<vmem>>, vector<4x16x1xf32>,
    return
  }
  func.func @transform_0(%arg0: i32) -> (i32, i32, i32) {
    %c0_i32 = arith.constant 0 : i32
    %c0_i32_0 = arith.constant 0 : i32
    %c0_i32_1 = arith.constant 0 : i32
    return %arg0, %c0_i32, %c0_i32_0 : i32, i32, i32
  }
  func.func @transform_1(%arg0: i32) -> (i32, i32) {
    %c0_i32 = arith.constant 0 : i32
    %c0_i32_0 = arith.constant 0 : i32
    %c0_i32_1 = arith.constant 0 : i32
    return %c0_i32, %c0_i32_0 : i32, i32
  }
  func.func @transform_2(%arg0: i32) -> (i32, i32) {
    %c0_i32 = arith.constant 0 : i32
    %c0_i32_0 = arith.constant 0 : i32
    %c0_i32_1 = arith.constant 0 : i32
    return %c0_i32, %c0_i32_0 : i32, i32
  }
  func.func @transform_3(%arg0: i32) -> (i32, i32) {
    %c0_i32 = arith.constant 0 : i32
    %c0_i32_0 = arith.constant 0 : i32
    %c0_i32_1 = arith.constant 0 : i32
    return %c0_i32, %c0_i32_0 : i32, i32
  }
  func.func @transform_4(%arg0: i32) -> (i32, i32) {
    %c0_i32 = arith.constant 0 : i32
    %c0_i32_0 = arith.constant 0 : i32
    %c0_i32_1 = arith.constant 0 : i32
    return %c0_i32, %c0_i32_0 : i32, i32
  }
  func.func @transform_5(%arg0: i32) -> (i32, i32) {
    %c0_i32 = arith.constant 0 : i32
    %c0_i32_0 = arith.constant 0 : i32
    %c0_i32_1 = arith.constant 0 : i32
    return %c0_i32, %c0_i32_0 : i32, i32
  }
  func.func @transform_6(%arg0: i32) -> (i32, i32) {
    %c0_i32 = arith.constant 0 : i32
    %c0_i32_0 = arith.constant 0 : i32
    %c0_i32_1 = arith.constant 0 : i32
    return %c0_i32, %c0_i32_0 : i32, i32
  }
  func.func @transform_7(%arg0: i32) -> (i32, i32) {
    %c0_i32 = arith.constant 0 : i32
    %c0_i32_0 = arith.constant 0 : i32
    %c0_i32_1 = arith.constant 0 : i32
    return %c0_i32, %c0_i32_0 : i32, i32
  }
  func.func @transform_8(%arg0: i32) -> (i32, i32) {
    %c0_i32 = arith.constant 0 : i32
    %c0_i32_0 = arith.constant 0 : i32
    %c0_i32_1 = arith.constant 0 : i32
    return %c0_i32, %c0_i32_0 : i32, i32
  }
  func.func @transform_9(%arg0: i32) -> (i32, i32, i32) {
    %c0_i32 = arith.constant 0 : i32
    %c0_i32_0 = arith.constant 0 : i32
    %c0_i32_1 = arith.constant 0 : i32
    %c0_i32_2 = arith.constant 0 : i32
    return %c0_i32, %c0_i32_0, %c0_i32_1 : i32, i32, i32
  }
  func.func @transform_10(%arg0: i32) -> (i32, i32, i32) {
    %c0_i32 = arith.constant 0 : i32
    %c0_i32_0 = arith.constant 0 : i32
    %c0_i32_1 = arith.constant 0 : i32
    return %arg0, %c0_i32, %c0_i32_0 : i32, i32, i32
  }
  func.func @transform_11(%arg0: i32) -> (i32, i32, i32) {
    %c0_i32 = arith.constant 0 : i32
    %c0_i32_0 = arith.constant 0 : i32
    %c0_i32_1 = arith.constant 0 : i32
    return %arg0, %c0_i32, %c0_i32_0 : i32, i32, i32
  }
  func.func @transform_12(%arg0: i32) -> (i32, i32, i32) {
    %c0_i32 = arith.constant 0 : i32
    %c0_i32_0 = arith.constant 0 : i32
    %c0_i32_1 = arith.constant 0 : i32
    return %arg0, %c0_i32, %c0_i32_0 : i32, i32, i32
  }
  func.func @transform_13(%arg0: i32) -> (i32, i32, i32) {
    %c0_i32 = arith.constant 0 : i32
    %c0_i32_0 = arith.constant 0 : i32
    %c0_i32_1 = arith.constant 0 : i32
    return %arg0, %c0_i32, %c0_i32_0 : i32, i32, i32
  }
}

module attributes {stable_mosaic.version = 11 : i64} {
  func.func @_attn_ofc_ff_kernel(%arg0: i32, %arg1: memref<4x8x32xf32, #tpu.memory_space<vmem>>, %arg2: memref<4x16x32xf32, #tpu.memory_space<vmem>>, %arg3: memref<4x16x32xf32, #tpu.memory_space<vmem>>, %arg4: memref<4x16x32xf32, #tpu.memory_space<vmem>>, %arg5: memref<16x32xf32, #tpu.memory_space<vmem>>, %arg6: memref<32x32xf32, #tpu.memory_space<vmem>>, %arg7: memref<1x32xf32, #tpu.memory_space<vmem>>, %arg8: memref<32x32xf32, #tpu.memory_space<vmem>>, %arg9: memref<1x32xf32, #tpu.memory_space<vmem>>, %arg10: memref<32x32xf32, #tpu.memory_space<vmem>>, %arg11: memref<1x32xf32, #tpu.memory_space<vmem>>, %arg12: memref<4x16x32xf32, #tpu.memory_space<vmem>>) attributes {dimension_semantics = [#tpu.dimension_semantics<parallel>], iteration_bounds = array<i64: 2>, scalar_prefetch = 0 : i64, scratch_operands = 0 : i64, tpu.core_type = #tpu.core_type<tc>, window_params = [{transform_indices = @transform_0, window_bounds = array<i64: 4, 8, 32>}, {transform_indices = @transform_1, window_bounds = array<i64: 4, 16, 32>}, {transform_indices = @transform_2, window_bounds = array<i64: 4, 16, 32>}, {transform_indices = @transform_3, window_bounds = array<i64: 4, 16, 32>}, {pipeline_mode = #tpu.pipeline_mode<synchronous>, transform_indices = @transform_4, window_bounds = array<i64: 16, 32>}, {pipeline_mode = #tpu.pipeline_mode<synchronous>, transform_indices = @transform_5, window_bounds = array<i64: 32, 32>}, {pipeline_mode = #tpu.pipeline_mode<synchronous>, transform_indices = @transform_6, window_bounds = array<i64: 1, 32>}, {pipeline_mode = #tpu.pipeline_mode<synchronous>, transform_indices = @transform_7, window_bounds = array<i64: 32, 32>}, {pipeline_mode = #tpu.pipeline_mode<synchronous>, transform_indices = @transform_8, window_bounds = array<i64: 1, 32>}, {pipeline_mode = #tpu.pipeline_mode<synchronous>, transform_indices = @transform_9, window_bounds = array<i64: 32, 32>}, {pipeline_mode = #tpu.pipeline_mode<synchronous>, transform_indices = @transform_10, window_bounds = array<i64: 1, 32>}, {transform_indices = @transform_11, window_bounds = array<i64: 4, 16, 32>}]} {
    %c0 = arith.constant 0 : index
    %c0_0 = arith.constant 0 : index
    %c0_1 = arith.constant 0 : index
    %0 = vector.load %arg1[%c0, %c0_0, %c0_1] : memref<4x8x32xf32, #tpu.memory_space<vmem>>, vector<4x8x32xf32>
    %c0_2 = arith.constant 0 : index
    %c0_3 = arith.constant 0 : index
    %c0_4 = arith.constant 0 : index
    %1 = vector.load %arg2[%c0_2, %c0_3, %c0_4] : memref<4x16x32xf32, #tpu.memory_space<vmem>>, vector<4x16x32xf32>
    %c0_5 = arith.constant 0 : index
    %c0_6 = arith.constant 0 : index
    %c0_7 = arith.constant 0 : index
    %2 = vector.load %arg3[%c0_5, %c0_6, %c0_7] : memref<4x16x32xf32, #tpu.memory_space<vmem>>, vector<4x16x32xf32>
    "tpu.trace_start"() <{level = 10 : i32, message = "bsd,bnd->bsn"}> : () -> ()
    %cst = arith.constant dense<0.000000e+00> : vector<4x8x16xf32>
    %3 = tpu.matmul %0, %1, %cst {dimension_numbers = #tpu.dot_dimension_numbers<[2], [2], [1], [1], [0, 0, 0, 1, 1, 1], [0], [0]>} : vector<4x8x32xf32>, vector<4x16x32xf32>, vector<4x8x16xf32> -> vector<4x8x16xf32>
    "tpu.trace_stop"() : () -> ()
    %cst_8 = arith.constant 0.176776692 : f32
    %4 = vector.broadcast %cst_8 : f32 to vector<4x8x16xf32>
    %5 = arith.mulf %3, %4 : vector<4x8x16xf32>
    %cst_9 = arith.constant dense<0xFF800000> : vector<4x8xf32>
    %6 = vector.multi_reduction <maximumf>, %5, %cst_9 [2] : vector<4x8x16xf32> to vector<4x8xf32>
    %7 = vector.shape_cast %6 : vector<4x8xf32> to vector<4x8x1xf32>
    %8 = vector.broadcast %7 : vector<4x8x1xf32> to vector<4x8x16xf32>
    %9 = arith.subf %5, %8 : vector<4x8x16xf32>
    %10 = math.exp %9 : vector<4x8x16xf32>
    %cst_10 = arith.constant dense<0.000000e+00> : vector<4x8xf32>
    %11 = vector.multi_reduction <add>, %10, %cst_10 [2] : vector<4x8x16xf32> to vector<4x8xf32>
    %12 = vector.shape_cast %11 : vector<4x8xf32> to vector<4x8x1xf32>
    %cst_11 = arith.constant 1.000000e+00 : f32
    %13 = vector.broadcast %cst_11 : f32 to vector<4x8x1xf32>
    %14 = arith.divf %13, %12 : vector<4x8x1xf32>
    %15 = vector.broadcast %14 : vector<4x8x1xf32> to vector<4x8x16xf32>
    %16 = arith.mulf %10, %15 : vector<4x8x16xf32>
    "tpu.trace_start"() <{level = 10 : i32, message = "bsn,bnd->bsd"}> : () -> ()
    %cst_12 = arith.constant dense<0.000000e+00> : vector<4x8x32xf32>
    %17 = tpu.matmul %16, %2, %cst_12 {dimension_numbers = #tpu.dot_dimension_numbers<[2], [1], [1], [2], [0, 0, 0, 1, 1, 2], [0], [0]>} : vector<4x8x16xf32>, vector<4x16x32xf32>, vector<4x8x32xf32> -> vector<4x8x32xf32>
    "tpu.trace_stop"() : () -> ()
    %cst_13 = arith.constant dense<0xFF800000> : vector<4x16xf32>
    %18 = vector.multi_reduction <maximumf>, %16, %cst_13 [1] : vector<4x8x16xf32> to vector<4x16xf32>
    %19 = vector.shape_cast %18 : vector<4x16xf32> to vector<4x1x16xf32>
    %20 = tpu.iota {dimensions = array<i32: 1>} : vector<4x8x16xi32>
    %21 = vector.broadcast %19 : vector<4x1x16xf32> to vector<4x8x16xf32>
    %22 = arith.cmpf oeq, %16, %21 : vector<4x8x16xf32>
    %c8_i32 = arith.constant 8 : i32
    %23 = vector.broadcast %c8_i32 : i32 to vector<4x8x16xi32>
    %24 = arith.select %22, %20, %23 : vector<4x8x16xi1>, vector<4x8x16xi32>
    %cst_14 = arith.constant dense<2147483647> : vector<4x16xi32>
    %25 = vector.multi_reduction <minsi>, %24, %cst_14 [1] : vector<4x8x16xi32> to vector<4x16xi32>
    %26 = tpu.iota {dimensions = array<i32: 2>} : vector<4x16x8xi32>
    %27 = vector.shape_cast %25 : vector<4x16xi32> to vector<4x16x1xi32>
    %28 = vector.broadcast %27 : vector<4x16x1xi32> to vector<4x16x8xi32>
    %29 = arith.cmpi eq, %28, %26 : vector<4x16x8xi32>
    %30 = arith.extui %29 : vector<4x16x8xi1> to vector<4x16x8xi32>
    %31 = arith.sitofp %30 : vector<4x16x8xi32> to vector<4x16x8xf32>
    "tpu.trace_start"() <{level = 10 : i32, message = "bns,bsd->bnd"}> : () -> ()
    %cst_15 = arith.constant dense<0.000000e+00> : vector<4x16x32xf32>
    %32 = tpu.matmul %31, %17, %cst_15 {dimension_numbers = #tpu.dot_dimension_numbers<[2], [1], [1], [2], [0, 0, 0, 1, 1, 2], [0], [0]>} : vector<4x16x8xf32>, vector<4x8x32xf32>, vector<4x16x32xf32> -> vector<4x16x32xf32>
    "tpu.trace_stop"() : () -> ()
    %c0_16 = arith.constant 0 : index
    %c0_17 = arith.constant 0 : index
    %c0_18 = arith.constant 0 : index
    %33 = vector.load %arg4[%c0_16, %c0_17, %c0_18] : memref<4x16x32xf32, #tpu.memory_space<vmem>>, vector<4x16x32xf32>
    %c0_19 = arith.constant 0 : index
    %c0_20 = arith.constant 0 : index
    %34 = vector.load %arg5[%c0_19, %c0_20] : memref<16x32xf32, #tpu.memory_space<vmem>>, vector<16x32xf32>
    %35 = vector.shape_cast %34 : vector<16x32xf32> to vector<1x16x32xf32>
    %36 = vector.broadcast %35 : vector<1x16x32xf32> to vector<4x16x32xf32>
    %37 = arith.addf %33, %36 : vector<4x16x32xf32>
    %38 = vector.shape_cast %32 : vector<4x16x32xf32> to vector<64x32xf32>
    %39 = vector.shape_cast %37 : vector<4x16x32xf32> to vector<64x32xf32>
    %c0_21 = arith.constant 0 : index
    %c0_22 = arith.constant 0 : index
    %40 = vector.load %arg6[%c0_21, %c0_22] : memref<32x32xf32, #tpu.memory_space<vmem>>, vector<32x32xf32>
    %cst_23 = arith.constant dense<0.000000e+00> : vector<64x32xf32>
    %41 = tpu.matmul %38, %40, %cst_23 {dimension_numbers = #tpu.dot_dimension_numbers<[1], [0], [0], [1], [0, 0, 1, 1], [], []>} : vector<64x32xf32>, vector<32x32xf32>, vector<64x32xf32> -> vector<64x32xf32>
    %c0_24 = arith.constant 0 : index
    %c0_25 = arith.constant 0 : index
    %42 = vector.load %arg7[%c0_24, %c0_25] : memref<1x32xf32, #tpu.memory_space<vmem>>, vector<1x32xf32>
    %43 = vector.broadcast %42 : vector<1x32xf32> to vector<64x32xf32>
    %44 = arith.addf %41, %43 : vector<64x32xf32>
    %45 = arith.addf %44, %39 : vector<64x32xf32>
    %cst_26 = arith.constant dense<0.000000e+00> : vector<64xf32>
    %46 = vector.multi_reduction <add>, %45, %cst_26 [1] : vector<64x32xf32> to vector<64xf32>
    %47 = vector.shape_cast %46 : vector<64xf32> to vector<64x1xf32>
    %cst_27 = arith.constant 3.200000e+01 : f32
    %48 = vector.broadcast %cst_27 : f32 to vector<64x1xf32>
    %49 = arith.divf %47, %48 : vector<64x1xf32>
    %50 = vector.broadcast %49 : vector<64x1xf32> to vector<64x32xf32>
    %51 = arith.subf %45, %50 : vector<64x32xf32>
    %52 = arith.mulf %51, %51 : vector<64x32xf32>
    %cst_28 = arith.constant dense<0.000000e+00> : vector<64xf32>
    %53 = vector.multi_reduction <add>, %52, %cst_28 [1] : vector<64x32xf32> to vector<64xf32>
    %54 = vector.shape_cast %53 : vector<64xf32> to vector<64x1xf32>
    %cst_29 = arith.constant 3.200000e+01 : f32
    %55 = vector.broadcast %cst_29 : f32 to vector<64x1xf32>
    %56 = arith.divf %54, %55 : vector<64x1xf32>
    %cst_30 = arith.constant 9.99999974E-6 : f32
    %57 = vector.broadcast %cst_30 : f32 to vector<64x1xf32>
    %58 = arith.addf %56, %57 : vector<64x1xf32>
    %59 = math.rsqrt %58 : vector<64x1xf32>
    %60 = vector.broadcast %59 : vector<64x1xf32> to vector<64x32xf32>
    %61 = arith.mulf %51, %60 : vector<64x32xf32>
    %c0_31 = arith.constant 0 : index
    %c0_32 = arith.constant 0 : index
    %62 = vector.load %arg8[%c0_31, %c0_32] : memref<32x32xf32, #tpu.memory_space<vmem>>, vector<32x32xf32>
    %cst_33 = arith.constant dense<0.000000e+00> : vector<64x32xf32>
    %63 = tpu.matmul %61, %62, %cst_33 {dimension_numbers = #tpu.dot_dimension_numbers<[1], [0], [0], [1], [0, 0, 1, 1], [], []>} : vector<64x32xf32>, vector<32x32xf32>, vector<64x32xf32> -> vector<64x32xf32>
    %c0_34 = arith.constant 0 : index
    %c0_35 = arith.constant 0 : index
    %64 = vector.load %arg9[%c0_34, %c0_35] : memref<1x32xf32, #tpu.memory_space<vmem>>, vector<1x32xf32>
    %65 = vector.broadcast %64 : vector<1x32xf32> to vector<64x32xf32>
    %66 = arith.addf %63, %65 : vector<64x32xf32>
    %cst_36 = arith.constant 0.000000e+00 : f32
    %67 = vector.broadcast %cst_36 : f32 to vector<64x32xf32>
    %68 = arith.maximumf %66, %67 : vector<64x32xf32>
    %c0_37 = arith.constant 0 : index
    %c0_38 = arith.constant 0 : index
    %69 = vector.load %arg10[%c0_37, %c0_38] : memref<32x32xf32, #tpu.memory_space<vmem>>, vector<32x32xf32>
    %cst_39 = arith.constant dense<0.000000e+00> : vector<64x32xf32>
    %70 = tpu.matmul %68, %69, %cst_39 {dimension_numbers = #tpu.dot_dimension_numbers<[1], [0], [0], [1], [0, 0, 1, 1], [], []>} : vector<64x32xf32>, vector<32x32xf32>, vector<64x32xf32> -> vector<64x32xf32>
    %c0_40 = arith.constant 0 : index
    %c0_41 = arith.constant 0 : index
    %71 = vector.load %arg11[%c0_40, %c0_41] : memref<1x32xf32, #tpu.memory_space<vmem>>, vector<1x32xf32>
    %72 = vector.broadcast %71 : vector<1x32xf32> to vector<64x32xf32>
    %73 = arith.addf %70, %72 : vector<64x32xf32>
    %74 = arith.addf %73, %61 : vector<64x32xf32>
    %cst_42 = arith.constant dense<0.000000e+00> : vector<64xf32>
    %75 = vector.multi_reduction <add>, %74, %cst_42 [1] : vector<64x32xf32> to vector<64xf32>
    %76 = vector.shape_cast %75 : vector<64xf32> to vector<64x1xf32>
    %cst_43 = arith.constant 3.200000e+01 : f32
    %77 = vector.broadcast %cst_43 : f32 to vector<64x1xf32>
    %78 = arith.divf %76, %77 : vector<64x1xf32>
    %79 = vector.broadcast %78 : vector<64x1xf32> to vector<64x32xf32>
    %80 = arith.subf %74, %79 : vector<64x32xf32>
    %81 = arith.mulf %80, %80 : vector<64x32xf32>
    %cst_44 = arith.constant dense<0.000000e+00> : vector<64xf32>
    %82 = vector.multi_reduction <add>, %81, %cst_44 [1] : vector<64x32xf32> to vector<64xf32>
    %83 = vector.shape_cast %82 : vector<64xf32> to vector<64x1xf32>
    %cst_45 = arith.constant 3.200000e+01 : f32
    %84 = vector.broadcast %cst_45 : f32 to vector<64x1xf32>
    %85 = arith.divf %83, %84 : vector<64x1xf32>
    %cst_46 = arith.constant 9.99999974E-6 : f32
    %86 = vector.broadcast %cst_46 : f32 to vector<64x1xf32>
    %87 = arith.addf %85, %86 : vector<64x1xf32>
    %88 = math.rsqrt %87 : vector<64x1xf32>
    %89 = vector.broadcast %88 : vector<64x1xf32> to vector<64x32xf32>
    %90 = arith.mulf %80, %89 : vector<64x32xf32>
    %91 = vector.shape_cast %90 : vector<64x32xf32> to vector<4x16x32xf32>
    %c0_47 = arith.constant 0 : index
    %c0_48 = arith.constant 0 : index
    %c0_49 = arith.constant 0 : index
    %92 = vector.load %arg12[%c0_47, %c0_48, %c0_49] : memref<4x16x32xf32, #tpu.memory_space<vmem>>, vector<4x16x32xf32>
    tpu.vector_store %arg12[%c0_47, %c0_48, %c0_49], %91 {strides = array<i32>} : memref<4x16x32xf32, #tpu.memory_space<vmem>>, vector<4x16x32xf32>,
    return
  }
  func.func @transform_0(%arg0: i32) -> (i32, i32, i32) {
    %c0_i32 = arith.constant 0 : i32
    %c0_i32_0 = arith.constant 0 : i32
    %c0_i32_1 = arith.constant 0 : i32
    return %arg0, %c0_i32, %c0_i32_0 : i32, i32, i32
  }
  func.func @transform_1(%arg0: i32) -> (i32, i32, i32) {
    %c0_i32 = arith.constant 0 : i32
    %c0_i32_0 = arith.constant 0 : i32
    %c0_i32_1 = arith.constant 0 : i32
    return %arg0, %c0_i32, %c0_i32_0 : i32, i32, i32
  }
  func.func @transform_2(%arg0: i32) -> (i32, i32, i32) {
    %c0_i32 = arith.constant 0 : i32
    %c0_i32_0 = arith.constant 0 : i32
    %c0_i32_1 = arith.constant 0 : i32
    return %arg0, %c0_i32, %c0_i32_0 : i32, i32, i32
  }
  func.func @transform_3(%arg0: i32) -> (i32, i32, i32) {
    %c0_i32 = arith.constant 0 : i32
    %c0_i32_0 = arith.constant 0 : i32
    %c0_i32_1 = arith.constant 0 : i32
    return %arg0, %c0_i32, %c0_i32_0 : i32, i32, i32
  }
  func.func @transform_4(%arg0: i32) -> (i32, i32) {
    %c0_i32 = arith.constant 0 : i32
    %c0_i32_0 = arith.constant 0 : i32
    %c0_i32_1 = arith.constant 0 : i32
    return %c0_i32, %c0_i32_0 : i32, i32
  }
  func.func @transform_5(%arg0: i32) -> (i32, i32) {
    %c0_i32 = arith.constant 0 : i32
    %c0_i32_0 = arith.constant 0 : i32
    %c0_i32_1 = arith.constant 0 : i32
    return %c0_i32, %c0_i32_0 : i32, i32
  }
  func.func @transform_6(%arg0: i32) -> (i32, i32) {
    %c0_i32 = arith.constant 0 : i32
    %c0_i32_0 = arith.constant 0 : i32
    %c0_i32_1 = arith.constant 0 : i32
    return %c0_i32, %c0_i32_0 : i32, i32
  }
  func.func @transform_7(%arg0: i32) -> (i32, i32) {
    %c0_i32 = arith.constant 0 : i32
    %c0_i32_0 = arith.constant 0 : i32
    %c0_i32_1 = arith.constant 0 : i32
    return %c0_i32, %c0_i32_0 : i32, i32
  }
  func.func @transform_8(%arg0: i32) -> (i32, i32) {
    %c0_i32 = arith.constant 0 : i32
    %c0_i32_0 = arith.constant 0 : i32
    %c0_i32_1 = arith.constant 0 : i32
    return %c0_i32, %c0_i32_0 : i32, i32
  }
  func.func @transform_9(%arg0: i32) -> (i32, i32) {
    %c0_i32 = arith.constant 0 : i32
    %c0_i32_0 = arith.constant 0 : i32
    %c0_i32_1 = arith.constant 0 : i32
    return %c0_i32, %c0_i32_0 : i32, i32
  }
  func.func @transform_10(%arg0: i32) -> (i32, i32) {
    %c0_i32 = arith.constant 0 : i32
    %c0_i32_0 = arith.constant 0 : i32
    %c0_i32_1 = arith.constant 0 : i32
    return %c0_i32, %c0_i32_0 : i32, i32
  }
  func.func @transform_11(%arg0: i32) -> (i32, i32, i32) {
    %c0_i32 = arith.constant 0 : i32
    %c0_i32_0 = arith.constant 0 : i32
    %c0_i32_1 = arith.constant 0 : i32
    return %arg0, %c0_i32, %c0_i32_0 : i32, i32, i32
  }
}

</mosaic_0001>

<bundles_post_ra>
// kernel: sparse_spatial_attention_forward.2
= control target key start
LH: loop header
LB: loop body
LE: loop exit
PB: predicated region body
PF: predicated region fallthrough
CT: control target
= control target key end

     0   :  { %19 = vsyncpa [#allocation3], 0  ;;  %s2657_s0 = inlined_call_operand.vmem [shape: f32[8,16,32], index: 0, kind: input, shape index: {}]   ;;  %s2658_s1 = inlined_call_operand.vmem [shape: f32[16,32], index: 1, kind: input, shape index: {}]   ;;  %s2659_s2 = inlined_call_operand.vmem [shape: f32[32,32], index: 2, kind: input, shape index: {}]   ;;  %s2660_s3 = inlined_call_operand.vmem [shape: f32[1,32], index: 3, kind: input, shape index: {}]   ;;  %s2661_s4 = inlined_call_operand.hbm [shape: f32[32,32], index: 4, kind: input, shape index: {}]   ;;  %s2662_s5 = inlined_call_operand.vmem [shape: f32[1,32], index: 5, kind: input, shape index: {}]   ;;  %s2663_s6 = inlined_call_operand.hbm [shape: f32[32,32], index: 6, kind: input, shape index: {}]   ;;  %s2664_s7 = inlined_call_operand.vmem [shape: f32[1,32], index: 7, kind: input, shape index: {}]   ;;  %s2665_s8 = inlined_call_operand.vmem [shape: f32[16,16], index: 8, kind: input, shape index: {}]   ;;  %s2666_s9 = inlined_call_operand.vmem [shape: f32[1,1,32], index: 9, kind: input, shape index: {}]   ;;  %s2667_s10 = inlined_call_operand.vmem [shape: f32[8,16,32], index: 10, kind: output, shape index: {0}]   ;;  %s2668_s11 = inlined_call_operand.vmem [shape: f32[8,16,32], index: 11, kind: output, shape index: {1}]   ;;  %s2669_s12 = inlined_call_operand.vmem [shape: f32[8,16,32], index: 12, kind: output, shape index: {2}]   ;;  %s2670_s13 = inlined_call_operand.vmem [shape: f32[8,16,1], index: 13, kind: output, shape index: {3}]  }
   0x1   :  { %20 = vsyncpa [#allocation5], 0  ;;  %s2367_s25 = smov 0  }
   0x2 LB: > { %s2674_s26 = sadd.s32 4294967295, %s2291_s25   ;;  %p1861_p0 = scmp.ge.s32.totalorder %s2291_s25, 1  ;;  %s2291_s25 = sphi %s2367_s25, %s26_s25  }
   0x3   : > { %p350_p1 = scmp.lt.s32.totalorder %s2291_s25, 3  ;;  %s2293_s27 = smov [#allocation2]  }
   0x4   : > { %s371_s28 = sshll.u32 %s2293_s27, 4  ;;  %p2381_p3 = scmp.eq.s32.totalorder %s2674_s26, 0  ;;  %s372_s28 = int_to_ptr.vmem [resolvable:$true] %s371_s28 }
   0x5   : > { %p2375_p2 = pnand %p1861_p0, %p350_p1  ;;  %s2294_s14 = smov [#allocation4]  }
   0x6   : > { %s2676_s30 = scalar_select %p2381_p3, 1, 0 }
   0x7   : > { %s2675_s29 = scalar_select %p2375_p2, 1, 0 }
   0x8   : > { %p2198_p4 = pneg %p2375_p2  ;;  %s387_s15 = sshll.u32 %s2294_s14, 4  ;;  %s2393_s15 = int_to_ptr.vmem [resolvable:$true] %s387_s15 }
   0x9   : > { %s2221_s19 = scalar_lea.hbm %s2661_s4, 512 }
   0xa   : > { %p2389_p5 = pnand %p2381_p3, %p2198_p4  ;;  %p2222_p6 = scmp.ne.s32.totalorder %s2661_s4, %s2221_s19 }
   0xb   : > { %p2228_p10 = scmp.lt.u32.totalorder %s2221_s19, %s2661_s4 }
   0xc   : > { %p2223_p7 = pneg %p2389_p5 }
   0xe   : > { %p2224_p8 = pnand %p2223_p7, %p2222_p6 }
  0x10   : > { %p2225_p9 = pneg %p2224_p8 }
  0x12   : > { %p2230_p11 = pnand %p2228_p10, %p2225_p9 }
  0x14   : > { %2233 = shalt.err (!%p2230_p11)
}
  0x15   : > { %s2234_s24 = scalar_lea.vmem %s372_s28, 512  ;;  %p2242_p1 = scmp.lt.s32.totalorder %s372_s28, %s372_s28 }
  0x16   : > { %p2235_p12 = scmp.ne.s32.totalorder %s372_s28, %s2234_s24  ;;  %p2243_p4 = scmp.lt.s32.totalorder %s2234_s24, %s2234_s24 }
  0x18   : > { %p2237_p13 = pnand %p2235_p12, %p2223_p7  ;;  %p2244_p3 = por %p2243_p4, %p2242_p1 }
  0x1a   : > { %p2238_p0 = pneg %p2237_p13 }
  0x1c   : > { %p2245_p2 = pnand %p2244_p3, %p2238_p0 }
  0x1e   : > { %2248 = shalt.err (!%p2245_p2)
}
  0x1f   : > { %s2295_s27 = smov 128   ;;  %s2296_s14 = smov 8  }
  0x20   : > { %2201 = dma.hbm_to_vmem [thread:$0]  (!%p2389_p5), %s2661_s4, 512, %s372_s28, [#allocation3], %s2295_s27, %s2295_s27, %s2296_s14  }
  0x21   : > { %s2249_s21 = scalar_lea.hbm %s2663_s6, 512 }
  0x22   : > { %p2250_p6 = scmp.ne.s32.totalorder %s2663_s6, %s2249_s21  ;;  %p2256_p8 = scmp.lt.u32.totalorder %s2249_s21, %s2663_s6 }
  0x24   : > { %p2252_p2 = pnand %p2250_p6, %p2223_p7 }
  0x26   : > { %p2253_p3 = pneg %p2252_p2 }
  0x28   : > { %p2258_p9 = pnand %p2256_p8, %p2253_p3 }
  0x2a   : > { %2261 = shalt.err (!%p2258_p9)
}
  0x2b   : > { %s2262_s28 = scalar_lea.vmem %s2393_s15, 512  ;;  %p2270_p13 = scmp.lt.s32.totalorder %s2393_s15, %s2393_s15 }
  0x2c   : > { %p2263_p10 = scmp.ne.s32.totalorder %s2393_s15, %s2262_s28  ;;  %p2271_p0 = scmp.lt.s32.totalorder %s2262_s28, %s2262_s28 }
  0x2e   : > { %p2265_p11 = pnand %p2263_p10, %p2223_p7  ;;  %p2272_p1 = por %p2271_p0, %p2270_p13 }
  0x30   : > { %p2266_p12 = pneg %p2265_p11 }
  0x32   : > { %p2273_p4 = pnand %p2272_p1, %p2266_p12 }
  0x34   : > { %2276 = shalt.err (!%p2273_p4)
}
  0x35   : > { %2204 = dma.hbm_to_vmem [thread:$0]  (!%p2389_p5), %s2663_s6, 512, %s2393_s15, [#allocation5], %s2295_s27, %s2295_s27, %s2296_s14  }
  0x36   : > { %p2678_p6 = scmp.ne.s32.totalorder %s2675_s29, 0 }
  0x37   : > { %p2679_p2 = scmp.ne.s32.totalorder (!%p2678_p6), %s2676_s30, 0 }
  0x38   : > { %422 = sbr.rel (%p2678_p6) target bundleno = 896 (0x380), region = 60 }
  0x3f   : > { %2282 = dma.done.wait (%p2679_p2), [#allocation3], 512  }
  0x40   : > { %2284 = vsyncadd (%p2679_p2), [#allocation3], 4294966784 }
  0x41   : > { %2286 = dma.done.wait (%p2679_p2), [#allocation5], 512  }
  0x42   : > { %2288 = vsyncadd (%p2679_p2), [#allocation5], 4294966784  ;;  %s2680_s16 = sadd.s32 4294967295, %s2291_s25   ;;  %v684_v0 = vld [vmem:[#allocation2] sm:$0xff]  ;;  %v685_v1 = vld [vmem:[#allocation2 + $0x8] sm:$0xff]  ;;  %vm554_vm0 = vcmask 261120  }
  0x43   : > { %s1868_s18 = sshll.u32 %s2680_s16, 2  ;;  %v686_v2 = vld [vmem:[#allocation2 + $0x10] sm:$0xff]  ;;  %v2134_v3 = vpack.c.bf16 %v685_v1, %v684_v0  ;;  %v687_v4 = vld [vmem:[#allocation2 + $0x18] sm:$0xff]  ;;  %v533_v6 = vld [vmem:[%s2658_s1] sm:$0xff]  ;;  %vm1298_vm2 = vcmask 130048   ;;  %vm1662_vm3 = vcmask 7168  }
  0x44   : > { %p491_p7 = scmp.lt.s32.totalorder %s1868_s18, 7  ;;  %v2138_v7 = vpack.c.bf16 %v687_v4, %v686_v2  ;;  %v543_v9 = vld [vmem:[%s2659_s2] sm:$0xff]  ;;  %v544_v11 = vld [vmem:[%s2659_s2 + $0x8] sm:$0xff]  ;;  %v545_v14 = vld [vmem:[%s2659_s2 + $0x10] sm:$0xff] }
  0x45   : > { %2135 = vmatprep.subr.bf16.mxu1 %v2134_v3  ;;  %v534_v12 = vld [vmem:[%s2658_s1 + $0x8] sm:$0xff]  ;;  %v2126_v13 = vpack.c.bf16 %v544_v11, %v543_v9  ;;  %v546_v15 = vld [vmem:[%s2659_s2 + $0x18] sm:$0xff]  ;;  %v800_v30 = vld [vmem:[#allocation4] sm:$0xff] }
  0x46   : > { %s2684_s18 = smov (!%p491_p7, %s1868_s18), 7  ;;  %2137 = vmatpush3.bf16.msra.mxu1 %v2134_v3  ;;  %v2130_v17 = vpack.c.bf16 %v546_v15, %v545_v14  ;;  %v801_v31 = vld [vmem:[#allocation4 + $0x8] sm:$0xff]  ;;  %v802_v33 = vld [vmem:[#allocation4 + $0x10] sm:$0xff]  ;;  %v803_v34 = vld [vmem:[#allocation4 + $0x18] sm:$0xff] }
  0x47   : > { %s2454_s15 = sshll.u32 %s2684_s18, 4  ;;  %2139 = vmatprep.subr.bf16.mxu1 %v2138_v7  ;;  %2127 = vmatprep.subr.bf16.mxu0 %v2126_v13  ;;  %v2142_v32 = vpack.c.bf16 %v801_v31, %v800_v30  ;;  %v2146_v35 = vpack.c.bf16 %v803_v34, %v802_v33  ;;  %v1892_v36 = vld [vmem:[%s2662_s5] ss:$0 sm:$0xff]  ;;  %vm2528_vm1 = vmpackc.low %vm554_vm0, %vm554_vm0  ;;  %v1289_v34 = vld [vmem:[%s2665_s8 + $0x8] sm:$0xff] }
  0x48   : > { %s2460_s14 = scalar_lea.vmem %s2657_s0, %s2454_s15  ;;  %2129 = vmatpush3.bf16.msra.mxu0 %v2126_v13  ;;  %s2519_s19 = scalar_lea.vmem %s2668_s11, %s2454_s15  ;;  %v1883_v40 = vld [vmem:[%s2660_s3] ss:$0 sm:$0xff] }
  0x49   : > { %v525_v5 = vld [vmem:[%s2460_s14] sm:$0xff]  ;;  %v526_v10 = vld [vmem:[%s2460_s14 + $0x8] sm:$0xff]  ;;  %v527_v16 = vld [vmem:[%s2460_s14 + $0x10] sm:$0xff]  ;;  %2131 = vmatprep.subr.bf16.mxu0 %v2130_v17  ;;  %s2536_s24 = scalar_lea.vmem %s2667_s10, %s2454_s15  ;;  %s2599_s18 = scalar_lea.vmem %s2669_s12, %s2454_s15 }
  0x4a   : > { %v535_v8 = vadd.f32 %v533_v6, %v525_v5  ;;  %v536_v18 = vadd.f32 %v534_v12, %v526_v10  ;;  %2141 = vmatpush3.bf16.msra.mxu1 %v2138_v7  ;;  %v537_v19 = vadd.f32 %v533_v6, %v527_v16  ;;  %v528_v20 = vld [vmem:[%s2460_s14 + $0x18] sm:$0xff]  ;;  %v529_v21 = vld [vmem:[%s2460_s14 + $0x20] sm:$0xff]  ;;  %v530_v24 = vld [vmem:[%s2460_s14 + $0x28] sm:$0xff]  ;;  %s523_s23 = scalar_lea.vmem %s2670_s13, %s2454_s15 }
  0x4b   : > { %v538_v22 = vadd.f32 %v534_v12, %v528_v20  ;;  %v539_v23 = vadd.f32 %v533_v6, %v529_v21  ;;  %v531_v25 = vld [vmem:[%s2460_s14 + $0x30] sm:$0xff]  ;;  %v540_v26 = vadd.f32 %v534_v12, %v530_v24  ;;  %v532_v28 = vld [vmem:[%s2460_s14 + $0x38] sm:$0xff]  ;;  %v1901_v11 = vld [vmem:[%s2664_s7] ss:$0 sm:$0xff] }
  0x4c   : > { %2038 = vmatprep.mubr.msk.f32.mxu1 %vm554_vm0, %v535_v8  ;;  %2018 = vmatprep.mubr.msk.f32.mxu0 %vm554_vm0, %v535_v8  ;;  %v541_v27 = vadd.f32 %v533_v6, %v531_v25  ;;  %v542_v29 = vadd.f32 %v534_v12, %v532_v28 }
  0x4d   : > { %2039 = vmatmul.mubr.msk.f32.vlgmr.msra.gmra.mrb[0].mxu1 %vm554_vm0, %v536_v18  ;;  %2133 = vmatpush3.bf16.msra.mxu0 %v2130_v17 }
  0x4e   : > { %2041 = vmatprep.mubr.msk.f32.mxu1 %vm554_vm0, %v537_v19  ;;  %2143 = vmatprep.subr.bf16.mxu0 %v2142_v32 }
  0x50   : > { %2019 = vmatmul.mubr.msk.f32.vlgmr.msra.gmra.mrb[0].mxu0 %vm554_vm0, %v536_v18 }
  0x51   : > { %2042 = vmatmul.mubr.msk.f32.gmra.mrb[2].mxu1 %vm554_vm0, %v538_v22  ;;  %2021 = vmatprep.mubr.msk.f32.mxu0 %vm554_vm0, %v537_v19 }
  0x52   : > { %2044 = vmatprep.mubr.msk.f32.mxu1 %vm554_vm0, %v539_v23  ;;  %2145 = vmatpush3.bf16.msra.mxu0 %v2142_v32  ;;  %v1288_v32 = vld [vmem:[%s2665_s8] sm:$0xff] }
  0x53   : > { %2147 = vmatprep.subr.bf16.mxu0 %v2146_v35 }
  0x54   : > { %2022 = vmatmul.mubr.msk.f32.gmra.mrb[2].mxu0 %vm554_vm0, %v538_v22 }
  0x55   : > { %2045 = vmatmul.mubr.msk.f32.gmra.mrb[4].mxu1 %vm554_vm0, %v540_v26  ;;  %2024 = vmatprep.mubr.msk.f32.mxu0 %vm554_vm0, %v539_v23 }
  0x56   : > { %2047 = vmatprep.mubr.msk.f32.mxu1 %vm554_vm0, %v541_v27  ;;  %2149 = vmatpush3.bf16.msra.mxu0 %v2146_v35 }
  0x58   : > { %2025 = vmatmul.mubr.msk.f32.gmra.mrb[4].mxu0 %vm554_vm0, %v540_v26 }
  0x59   : > { %2048 = vmatmul.mubr.msk.f32.gmra.mrb[6].mxu1 %vm554_vm0, %v542_v29  ;;  %2027 = vmatprep.mubr.msk.f32.mxu0 %vm554_vm0, %v541_v27 }
  0x5c   : > { %2028 = vmatmul.mubr.msk.f32.gmra.mrb[6].mxu0 %vm554_vm0, %v542_v29 }
  0x5d   : > { %2058 = vmatprep.mubr.msk.f32.mxu0 %vm554_vm0, %v535_v8 }
  0x60   : > { %2059 = vmatmul.mubr.msk.f32.vlgmr.msra.gmra.mrb[8].mxu0 %vm554_vm0, %v536_v18 }
  0x61   : > { %2061 = vmatprep.mubr.msk.f32.mxu0 %vm554_vm0, %v537_v19 }
  0x64   : > { %2062 = vmatmul.mubr.msk.f32.gmra.mrb[10].mxu0 %vm554_vm0, %v538_v22 }
  0x65   : > { %2064 = vmatprep.mubr.msk.f32.mxu0 %vm554_vm0, %v539_v23 }
  0x68   : > { %2065 = vmatmul.mubr.msk.f32.gmra.mrb[12].mxu0 %vm554_vm0, %v540_v26 }
  0x69   : > { %2067 = vmatprep.mubr.msk.f32.mxu0 %vm554_vm0, %v541_v27 }
  0x6c   : > { %2068 = vmatmul.mubr.msk.f32.gmra.mrb[14].mxu0 %vm554_vm0, %v542_v29 }
 0x120   : > { %v2040_v37 = vpop.f32.mrb[0].mxu1 }
 0x121   : > { %v767_v38 = vadd.f32 %v2040_v37, %v1892_v36  ;;  %v761_v39 = vpop.f32.mrb[1].mxu1 }
 0x122   : > { %v762_v41 = vadd.f32 %v1892_v36, %v761_v39 }
 0x123   : > { %925 = vst.msk [vmem:[%s2519_s19 + $0x8] sm:$0xff] %vm554_vm0, %v767_v38  ;;  %v2020_v43 = vpop.f32.mrb[0].mxu0 }
 0x124   : > { %924 = vst.msk [vmem:[%s2519_s19] sm:$0xff] %vm554_vm0, %v762_v41  ;;  %v2150_v44 = vpack.c.bf16 %v767_v38, %v762_v41  ;;  %v2043_v45 = vpop.f32.mrb[2].mxu1  ;;  %v651_v46 = vadd.f32 %v2020_v43, %v1883_v40  ;;  %v645_v47 = vpop.f32.mrb[1].mxu0 }
 0x125   : > { %v777_v48 = vadd.f32 %v2043_v45, %v1892_v36  ;;  %v771_v49 = vpop.f32.mrb[3].mxu1  ;;  %v646_v50 = vadd.f32 %v1883_v40, %v645_v47 }
 0x126   : > { %2152 = vmatprep.subr.msk.bf16.mxu1 %vm2528_vm1, %v2150_v44  ;;  %v772_v51 = vadd.f32 %v1892_v36, %v771_v49  ;;  %917 = vst.msk [vmem:[%s2536_s24 + $0x8] sm:$0xff] %vm554_vm0, %v651_v46 }
 0x127   : > { %927 = vst.msk [vmem:[%s2519_s19 + $0x18] sm:$0xff] %vm554_vm0, %v777_v48  ;;  %2155 = vmatpush3.bf16.xpose.msk.msra.mxu1 %vm2528_vm1, %v2150_v44  ;;  %916 = vst.msk [vmem:[%s2536_s24] sm:$0xff] %vm554_vm0, %v646_v50  ;;  %2074 = vmatprep.mubr.msk.f32.mxu1 %vm554_vm0, %v646_v50  ;;  %v2023_v52 = vpop.f32.mrb[2].mxu0  ;;  %v1934_v50 = vld [vmem:[%s2666_s9] ss:$0 sm:$0xff] }
 0x128   : > { %926 = vst.msk [vmem:[%s2519_s19 + $0x10] sm:$0xff] %vm554_vm0, %v772_v51  ;;  %v2156_v53 = vpack.c.bf16 %v777_v48, %v772_v51  ;;  %v2046_v54 = vpop.f32.mrb[4].mxu1  ;;  %v661_v55 = vadd.f32 %v2023_v52, %v1883_v40  ;;  %v655_v56 = vpop.f32.mrb[3].mxu0 }
 0x129   : > { %v787_v57 = vadd.f32 %v2046_v54, %v1892_v36  ;;  %v781_v58 = vpop.f32.mrb[5].mxu1  ;;  %v656_v59 = vadd.f32 %v1883_v40, %v655_v56 }
 0x12a   : > { %v782_v60 = vadd.f32 %v1892_v36, %v781_v58  ;;  %2158 = vmatprep.subr.msk.bf16.mxu1 %vm2528_vm1, %v2156_v53  ;;  %919 = vst.msk [vmem:[%s2536_s24 + $0x18] sm:$0xff] %vm554_vm0, %v661_v55 }
 0x12b   : > { %929 = vst.msk [vmem:[%s2519_s19 + $0x28] sm:$0xff] %vm554_vm0, %v787_v57  ;;  %918 = vst.msk [vmem:[%s2536_s24 + $0x10] sm:$0xff] %vm554_vm0, %v656_v59  ;;  %v2026_v61 = vpop.f32.mrb[4].mxu0 }
 0x12c   : > { %928 = vst.msk [vmem:[%s2519_s19 + $0x20] sm:$0xff] %vm554_vm0, %v782_v60  ;;  %v2162_v62 = vpack.c.bf16 %v787_v57, %v782_v60  ;;  %v671_v63 = vadd.f32 %v2026_v61, %v1883_v40  ;;  %v665_v0 = vpop.f32.mrb[5].mxu0  ;;  %v2049_v1 = vpop.f32.mrb[6].mxu1 }
 0x12d   : > { %v666_v2 = vadd.f32 %v1883_v40, %v665_v0  ;;  %v797_v3 = vadd.f32 %v2049_v1, %v1892_v36  ;;  %v791_v4 = vpop.f32.mrb[7].mxu1 }
 0x12e   : > { %2075 = vmatmul.mubr.msk.f32.vlgmr.msra.gmra.mrb[8].mxu1 %vm554_vm0, %v651_v46  ;;  %2164 = vmatprep.subr.msk.bf16.mxu0 %vm2528_vm1, %v2162_v62  ;;  %921 = vst.msk [vmem:[%s2536_s24 + $0x28] sm:$0xff] %vm554_vm0, %v671_v63  ;;  %v792_v5 = vadd.f32 %v1892_v36, %v791_v4 }
 0x12f   : > { %2161 = vmatpush3.bf16.xpose.msk.msra.mxu1 %vm2528_vm1, %v2156_v53  ;;  %2167 = vmatpush3.bf16.xpose.msk.msra.mxu0 %vm2528_vm1, %v2162_v62  ;;  %920 = vst.msk [vmem:[%s2536_s24 + $0x20] sm:$0xff] %vm554_vm0, %v666_v2  ;;  %931 = vst.msk [vmem:[%s2519_s19 + $0x38] sm:$0xff] %vm554_vm0, %v797_v3  ;;  %v2029_v6 = vpop.f32.mrb[6].mxu0 }
 0x130   : > { %2081 = vmatprep.mubr.msk.f32.mxu1 %vm554_vm0, %v656_v59  ;;  %930 = vst.msk [vmem:[%s2519_s19 + $0x30] sm:$0xff] %vm554_vm0, %v792_v5  ;;  %v2168_v7 = vpack.c.bf16 %v797_v3, %v792_v5  ;;  %2088 = vmatprep.mubr.msk.f32.mxu0 %vm554_vm0, %v666_v2  ;;  %v681_v8 = vadd.f32 %v2029_v6, %v1883_v40  ;;  %v675_v9 = vpop.f32.mrb[7].mxu0 }
 0x131   : > { %v676_v10 = vadd.f32 %v1883_v40, %v675_v9 }
 0x132   : > { %2170 = vmatprep.subr.msk.bf16.mxu1 %vm2528_vm1, %v2168_v7  ;;  %923 = vst.msk [vmem:[%s2536_s24 + $0x38] sm:$0xff] %vm554_vm0, %v681_v8 }
 0x133   : > { %922 = vst.msk [vmem:[%s2536_s24 + $0x30] sm:$0xff] %vm554_vm0, %v676_v10  ;;  %v2060_v12 = vpop.f32.mrb[8].mxu0 }
 0x134   : > { %v883_v13 = vadd.f32 %v2060_v12, %v1901_v11  ;;  %v877_v14 = vpop.f32.mrb[9].mxu0 }
 0x135   : > { %v878_v15 = vadd.f32 %v1901_v11, %v877_v14 }
 0x136   : > { %2082 = vmatmul.mubr.msk.f32.vlgmr.msra.gmra.mrb[10].mxu1 %vm554_vm0, %v661_v55  ;;  %2089 = vmatmul.mubr.msk.f32.vlgmr.msra.gmra.mrb[16].mxu0 %vm554_vm0, %v671_v63  ;;  %933 = vst.msk [vmem:[%s2599_s18 + $0x8] sm:$0xff] %vm554_vm0, %v883_v13 }
 0x137   : > { %2173 = vmatpush3.bf16.xpose.msk.msra.mxu1 %vm2528_vm1, %v2168_v7  ;;  %2095 = vmatprep.mubr.msk.f32.mxu1 %vm554_vm0, %v676_v10  ;;  %932 = vst.msk [vmem:[%s2599_s18] sm:$0xff] %vm554_vm0, %v878_v15  ;;  %v2174_v16 = vpack.c.bf16 %v883_v13, %v878_v15  ;;  %v2063_v17 = vpop.f32.mrb[10].mxu0 }
 0x138   : > { %v887_v18 = vpop.f32.mrb[11].mxu0  ;;  %v893_v19 = vadd.f32 %v2063_v17, %v1901_v11 }
 0x139   : > { %2175 = vmatprep.subr.bf16.mxu0 %v2174_v16  ;;  %v888_v20 = vadd.f32 %v1901_v11, %v887_v18 }
 0x13a   : > { %2177 = vmatpush3.bf16.msra.mxu0 %v2174_v16  ;;  %935 = vst.msk [vmem:[%s2599_s18 + $0x18] sm:$0xff] %vm554_vm0, %v893_v19 }
 0x13b   : > { %934 = vst.msk [vmem:[%s2599_s18 + $0x10] sm:$0xff] %vm554_vm0, %v888_v20  ;;  %v2178_v21 = vpack.c.bf16 %v893_v19, %v888_v20  ;;  %v2066_v22 = vpop.f32.mrb[12].mxu0 }
 0x13c   : > { %v897_v23 = vpop.f32.mrb[13].mxu0  ;;  %v903_v24 = vadd.f32 %v2066_v22, %v1901_v11 }
 0x13d   : > { %v898_v25 = vadd.f32 %v1901_v11, %v897_v23  ;;  %2179 = vmatprep.subr.bf16.mxu1 %v2178_v21 }
 0x13e   : > { %2096 = vmatmul.mubr.msk.f32.vlgmr.msra.gmra.mrb[12].mxu1 %vm554_vm0, %v681_v8  ;;  %937 = vst.msk [vmem:[%s2599_s18 + $0x28] sm:$0xff] %vm554_vm0, %v903_v24 }
 0x13f   : > { %2181 = vmatpush3.bf16.msra.mxu1 %v2178_v21  ;;  %936 = vst.msk [vmem:[%s2599_s18 + $0x20] sm:$0xff] %vm554_vm0, %v898_v25  ;;  %v2182_v26 = vpack.c.bf16 %v903_v24, %v898_v25  ;;  %v2069_v27 = vpop.f32.mrb[14].mxu0 }
 0x140   : > { %v907_v28 = vpop.f32.mrb[15].mxu0  ;;  %v913_v29 = vadd.f32 %v2069_v27, %v1901_v11 }
 0x141   : > { %v908_v30 = vadd.f32 %v1901_v11, %v907_v28  ;;  %2183 = vmatprep.subr.bf16.mxu0 %v2182_v26 }
 0x142   : > { %939 = vst.msk [vmem:[%s2599_s18 + $0x38] sm:$0xff] %vm554_vm0, %v913_v29 }
 0x143   : > { %938 = vst.msk [vmem:[%s2599_s18 + $0x30] sm:$0xff] %vm554_vm0, %v908_v30  ;;  %v2186_v31 = vpack.c.bf16 %v913_v29, %v908_v30 }
 0x145   : > { %2187 = vmatprep.subr.bf16.mxu1 %v2186_v31 }
 0x201   : > { %v2076_v33 = vpop.f32.mrb[8].mxu1 }
 0x202   : > { %v1018_v35 = vpop.f32.mrb[9].mxu1  ;;  %v1291_v37 = vmul.f32 %v2076_v33, %v1289_v34 }
 0x203   : > { %v1290_v36 = vmul.f32 %v1288_v32, %v1018_v35 }
 0x205   : > { %2102 = vmatprep.mubr.msk.f32.mxu0 %vm1298_vm2, %v1290_v36 }
 0x206   : > { %2103 = vmatmul.mubr.msk.f32.vlgmr.msra.gmra.mrb[18].mxu0 %vm1298_vm2, %v1291_v37 }
 0x207   : > { %2185 = vmatpush3.bf16.msra.mxu0 %v2182_v26 }
 0x209   : > { %v2083_v38 = vpop.f32.mrb[10].mxu1  ;;  %v2090_v39 = vpop.f32.mrb[16].mxu0 }
 0x20a   : > { %v1105_v40 = vpop.f32.mrb[11].mxu1  ;;  %v1295_v41 = vmul.f32 %v2090_v39, %v1289_v34  ;;  %v1192_v42 = vpop.f32.mrb[17].mxu0  ;;  %v1293_v45 = vmul.f32 %v2083_v38, %v1289_v34 }
 0x20b   : > { %v1292_v43 = vmul.f32 %v1288_v32, %v1105_v40  ;;  %v1294_v44 = vmul.f32 %v1288_v32, %v1192_v42 }
 0x20d   : > { %2109 = vmatprep.mubr.msk.f32.mxu1 %vm1298_vm2, %v1292_v43  ;;  %2116 = vmatprep.mubr.msk.f32.mxu0 %vm1298_vm2, %v1294_v44 }
 0x20e   : > { %2110 = vmatmul.mubr.msk.f32.vlgmr.msra.gmra.mrb[14].mxu1 %vm1298_vm2, %v1293_v45  ;;  %2117 = vmatmul.mubr.msk.f32.vlgmr.msra.gmra.mrb[20].mxu0 %vm1298_vm2, %v1295_v41 }
 0x20f   : > { %2189 = vmatpush3.bf16.msra.mxu1 %v2186_v31 }
 0x211   : > { %v2097_v46 = vpop.f32.mrb[12].mxu1 }
 0x212   : > { %v1297_v47 = vmul.f32 %v2097_v46, %v1289_v34  ;;  %v1279_v48 = vpop.f32.mrb[13].mxu1 }
 0x213   : > { %v1296_v49 = vmul.f32 %v1288_v32, %v1279_v48 }
 0x215   : > { %2123 = vmatprep.mubr.msk.f32.mxu1 %vm1298_vm2, %v1296_v49 }
 0x216   : > { %2124 = vmatmul.mubr.msk.f32.vlgmr.msra.gmra.mrb[16].mxu1 %vm1298_vm2, %v1297_v47 }
 0x2d9   : > { %v2104_v51 = vpop.f32.mrb[18].mxu0 }
 0x2da   : > { %v1631_v52 = vmul.f32 %v2104_v51, %v1934_v50  ;;  %v1371_v53 = vpop.f32.mrb[19].mxu0 }
 0x2db   : > { %v1630_v55 = vmul.f32 %v1934_v50, %v1371_v53 }
 0x2dc   : > { %v1641_v54 = vsel %vm554_vm0, %v1631_v52, 0.0 }
 0x2dd   : > { %1642 = vadd.xlane.f32.xlu0 %v1641_v54  ;;  %v1638_v56 = vsel %vm554_vm0, %v1630_v55, 0.0 }
 0x2e1   : > { %v2111_v57 = vpop.f32.mrb[14].mxu1  ;;  %1639 = vadd.xlane.f32.xlu0 %v1638_v56  ;;  %v2118_v58 = vpop.f32.mrb[20].mxu0 }
 0x2e2   : > { %v1633_v59 = vmul.f32 %v2111_v57, %v1934_v50  ;;  %v1452_v60 = vpop.f32.mrb[15].mxu1  ;;  %v1533_v61 = vpop.f32.mrb[21].mxu0  ;;  %v1635_v63 = vmul.f32 %v2118_v58, %v1934_v50 }
 0x2e3   : > { %v1634_v62 = vmul.f32 %v1934_v50, %v1533_v61  ;;  %v1632_v2 = vmul.f32 %v1934_v50, %v1452_v60 }
 0x2e4   : > { %v1647_v0 = vsel %vm554_vm0, %v1633_v59, 0.0  ;;  %v1653_v3 = vsel %vm554_vm0, %v1635_v63, 0.0 }
 0x2e5   : > { %1648 = vadd.xlane.f32.xlu1 %v1647_v0  ;;  %v1650_v1 = vsel %vm554_vm0, %v1634_v62, 0.0  ;;  %v1644_v7 = vsel %vm554_vm0, %v1632_v2, 0.0 }
 0x2e6   : > { %1651 = vadd.xlane.f32.xlu0 %v1650_v1 }
 0x2e9   : > { %1654 = vadd.xlane.f32.xlu1 %v1653_v3  ;;  %v2125_v4 = vpop.f32.mrb[16].mxu1 }
 0x2ea   : > { %v1614_v5 = vpop.f32.mrb[17].mxu1  ;;  %v1637_v8 = vmul.f32 %v2125_v4, %v1934_v50 }
 0x2eb   : > { %v1636_v6 = vmul.f32 %v1934_v50, %v1614_v5 }
 0x2ec   : > { %v1659_v10 = vsel %vm554_vm0, %v1637_v8, 0.0 }
 0x2ed   : > { %1645 = vadd.xlane.f32.xlu1 %v1644_v7  ;;  %v1656_v9 = vsel %vm554_vm0, %v1636_v6, 0.0 }
 0x2ee   : > { %1657 = vadd.xlane.f32.xlu0 %v1656_v9 }
 0x2f1   : > { %1660 = vadd.xlane.f32.xlu1 %v1659_v10 }
 0x36a   : > { %v1643_v11 = vpop.xlane.xlu0 %1642 }
 0x36b   : > { %1664 = vst.msk [vmem:[%s523_s23 + $0x8] sm:$0xff] %vm1662_vm3, %v1643_v11 }
 0x36e   : > { %v1640_v12 = vpop.xlane.xlu0 %1639 }
 0x36f   : > { %1663 = vst.msk [vmem:[%s523_s23] sm:$0xff] %vm1662_vm3, %v1640_v12 }
 0x372   : > { %v1649_v13 = vpop.xlane.xlu1 %1648 }
 0x373   : > { %1666 = vst.msk [vmem:[%s523_s23 + $0x18] sm:$0xff] %vm1662_vm3, %v1649_v13  ;;  %v1652_v15 = vpop.xlane.xlu0 %1651 }
 0x374   : > { %1667 = vst.msk [vmem:[%s523_s23 + $0x20] sm:$0xff] %vm1662_vm3, %v1652_v15 }
 0x376   : > { %v1655_v14 = vpop.xlane.xlu1 %1654 }
 0x377   : > { %1668 = vst.msk [vmem:[%s523_s23 + $0x28] sm:$0xff] %vm1662_vm3, %v1655_v14 }
 0x37a   : > { %v1646_v16 = vpop.xlane.xlu1 %1645 }
 0x37b   : > { %1665 = vst.msk [vmem:[%s523_s23 + $0x10] sm:$0xff] %vm1662_vm3, %v1646_v16  ;;  %v1658_v17 = vpop.xlane.xlu0 %1657 }
 0x37c   : > { %1669 = vst.msk [vmem:[%s523_s23 + $0x30] sm:$0xff] %vm1662_vm3, %v1658_v17 }
 0x37e   : > { %v1661_v18 = vpop.xlane.xlu1 %1660 }
 0x37f   : > { %1670 = vst.msk [vmem:[%s523_s23 + $0x38] sm:$0xff] %vm1662_vm3, %v1661_v18 }
 0x380 PF: > { %s26_s25 = sadd.s32 1, %s2291_s25  }
 0x381   : > { %p23_p5 = scmp.ge.s32.totalorder %s26_s25, 4  }
 0x383   :  { %25 = sbr.rel (!%p23_p5) target bundleno = 2 (0x2), region = 135 }
 0x38a   :  { %1752 = vsyncpa [#allocation3], 1 }
 0x38b   :  { %1754 = vsyncpa [#allocation3 + $0x1], 1 }
 0x38c   :  { %1755 = vsyncpa [#allocation5], 1 }

// kernel: sparse_spatial_attention_forward.3
= control target key start
LH: loop header
LB: loop body
LE: loop exit
PB: predicated region body
PF: predicated region fallthrough
CT: control target
= control target key end

     0   :  { %16 = vsyncpa [#allocation3], 0  ;;  %s3416_s0 = inlined_call_operand.vmem [shape: f32[8,8,32], index: 0, kind: input, shape index: {}]   ;;  %s3417_s1 = inlined_call_operand.vmem [shape: f32[8,16,32], index: 1, kind: input, shape index: {}]   ;;  %s3418_s2 = inlined_call_operand.vmem [shape: f32[8,16,32], index: 2, kind: input, shape index: {}]   ;;  %s3419_s3 = inlined_call_operand.vmem [shape: f32[8,16,32], index: 3, kind: input, shape index: {}]   ;;  %s3420_s4 = inlined_call_operand.vmem [shape: f32[16,32], index: 4, kind: input, shape index: {}]   ;;  %s3421_s5 = inlined_call_operand.vmem [shape: f32[32,32], index: 5, kind: input, shape index: {}]   ;;  %s3422_s6 = inlined_call_operand.vmem [shape: f32[1,32], index: 6, kind: input, shape index: {}]   ;;  %s3423_s7 = inlined_call_operand.vmem [shape: f32[32,32], index: 7, kind: input, shape index: {}]   ;;  %s3424_s8 = inlined_call_operand.vmem [shape: f32[1,32], index: 8, kind: input, shape index: {}]   ;;  %s3425_s9 = inlined_call_operand.vmem [shape: f32[32,32], index: 9, kind: input, shape index: {}]   ;;  %s3426_s10 = inlined_call_operand.vmem [shape: f32[1,32], index: 10, kind: input, shape index: {}]   ;;  %s3427_s11 = inlined_call_operand.hbm [shape: f32[8,16,32], index: 11, kind: output, shape index: {}]  }
   0x1   :  { %18 = vsyncpa [#allocation3 + $0x1], 0  ;;  %s2962_s17 = smov 0   ;;  %s2964_s18 = smov 0  }
   0x2   :  { %s2966_s19 = smov 0   ;;  %s2968_s20 = smov 0  }
   0x3 LB: > { %s2983_s21 = sadd.s32 4294967295, %s2894_s20   ;;  %s2394_s22 = sadd.s32 4294967294, %s2894_s20   ;;  %s2894_s20 = sphi %s2968_s20, %s3435_s20   ;;  %s2890_s19 = sphi %s2966_s19, %s3434_s19   ;;  %s2886_s18 = sphi %s2964_s18, %s3433_s18   ;;  %s2882_s17 = sphi %s2962_s17, %s3432_s17  }
   0x4   : > { %s2987_s23 = sadd.s32 1, %s2894_s20   ;;  %s282_s24 = sadd.s32 1, %s2890_s19 }
   0x5   : > { %s279_s25 = ssub.s32 %s2894_s20, %s2987_s23  ;;  %p292_p0 = scmp.ne.s32.totalorder %s2890_s19, %s2886_s18 }
   0x6   : > { %p280_p1 = scmp.eq.s32.totalorder %s279_s25, 0  ;;  %p293_p2 = scmp.eq.s32.totalorder %s2983_s21, 1 }
   0x7   : > { %p298_p3 = scmp.ne.s32.totalorder %s2886_s18, %s2882_s17  ;;  %p299_p4 = scmp.eq.s32.totalorder %s2394_s22, 1 }
   0x8   : > { %s2998_s26 = scalar_select %p280_p1, %s2890_s19, %s282_s24  }
   0x9   : > { %p3000_p5 = por %p293_p2, %p292_p0  ;;  %p3004_p6 = por %p299_p4, %p298_p3 }
   0xa   : > { %p2397_p7 = scmp.ge.s32.totalorder %s2894_s20, 1  ;;  %p377_p8 = scmp.lt.s32.totalorder %s2894_s20, 3 }
   0xc   : > { %p378_p9 = pnand %p2397_p7, %p377_p8 }
   0xd   : > { %s2399_s29 = sshll.u32 (!%p378_p9), %s2983_s21, 2  ;;  %v2896_v0 = vmov (!%p378_p9), 0.0|0.0   ;;  %vm2897_vm0 = vmmov (!%p378_p9), 0   ;;  %v2898_v1 = vmov (!%p378_p9), 0.0   ;;  %vm483_vm1 = vcmask (!%p378_p9), 261120  }
   0xe   : > { %381 = sbr.rel (%p378_p9) target bundleno = 2296 (0x8f8), region = 64  ;;  %2688 = vmatprep.subr.bf16.mxu1 (!%p378_p9), %v2896_v0  ;;  %2696 = vmatprep.subr.bf16.mxu0 (!%p378_p9), %v2896_v0  ;;  %p436_p10 = scmp.lt.s32.totalorder (!%p378_p9), %s2399_s29, 7  ;;  %vm3025_vm2 = vmpackc.low (!%p378_p9), %vm483_vm1, %vm483_vm1  ;;  %vm804_vm3 = vcmask (!%p378_p9), 130048  }
   0xf   : > { %2556 = vmatprep.mubr.msk.f32.mxu1 (!%p378_p9), %vm2897_vm0, %v2898_v1  ;;  %2570 = vmatprep.mubr.msk.f32.mxu0 (!%p378_p9), %vm2897_vm0, %v2898_v1 }
  0x15   : > { %s3437_s29 = smov (!%p436_p10, %s2399_s29), 7 }
  0x16   : > { %s3017_s30 = sshll.u32 %s3437_s29, 4  ;;  %s2400_s15 = sshll.u32 %s3437_s29, 3 }
  0x17   : > { %s446_s14 = scalar_lea.vmem %s3417_s1, %s3017_s30  ;;  %s439_s24 = scalar_lea.vmem %s3416_s0, %s2400_s15 }
  0x18   : > { %v467_v3 = vld [vmem:[%s446_s14] sm:$0xff]  ;;  %v468_v4 = vld [vmem:[%s446_s14 + $0x8] sm:$0xff]  ;;  %v469_v9 = vld [vmem:[%s446_s14 + $0x10] sm:$0xff]  ;;  %s3068_s12 = scalar_lea.vmem %s3418_s2, %s3017_s30  ;;  %s2899_s29 = smov [#allocation2]  }
  0x19   : > { %v471_v5 = vld [vmem:[%s446_s14 + $0x20] sm:$0xff]  ;;  %v2689_v6 = vpack.c.bf16 %v468_v4, %v467_v3  ;;  %v472_v7 = vld [vmem:[%s446_s14 + $0x28] sm:$0xff]  ;;  %v470_v10 = vld [vmem:[%s446_s14 + $0x18] sm:$0xff] }
  0x1a   : > { %v2697_v8 = vpack.c.bf16 %v472_v7, %v471_v5  ;;  %v463_v11 = vld [vmem:[%s439_s24] sm:$0xff]  ;;  %v2693_v12 = vpack.c.bf16 %v470_v10, %v469_v9  ;;  %v465_v13 = vld [vmem:[%s439_s24 + $0x10] sm:$0xff]  ;;  %v474_v15 = vld [vmem:[%s446_s14 + $0x38] sm:$0xff] }
  0x1b   : > { %2691 = vmatpush3.bf16.xpose.msk.msra.mxu1 %vm3025_vm2, %v2689_v6  ;;  %v473_v14 = vld [vmem:[%s446_s14 + $0x30] sm:$0xff]  ;;  %v464_v16 = vld [vmem:[%s439_s24 + $0x8] sm:$0xff]  ;;  %v466_v18 = vld [vmem:[%s439_s24 + $0x18] sm:$0xff]  ;;  %s3139_s14 = scalar_lea.vmem %s3419_s3, %s3017_s30  ;;  %s432_s30 = sand.u32 1, %s2886_s18  }
  0x1c   : > { %2699 = vmatpush3.bf16.xpose.msk.msra.mxu0 %vm3025_vm2, %v2697_v8  ;;  %2692 = vmatprep.subr.bf16.mxu1 %v2896_v0  ;;  %v2701_v17 = vpack.c.bf16 %v474_v15, %v473_v14  ;;  %v475_v55 = vld [vmem:[%s3068_s12] sm:$0xff]  ;;  %v476_v56 = vld [vmem:[%s3068_s12 + $0x8] sm:$0xff]  ;;  %v477_v58 = vld [vmem:[%s3068_s12 + $0x10] sm:$0xff] }
  0x1d   : > { %2704 = vmatprep.subr.bf16.mxu0 %v2896_v0  ;;  %v2705_v57 = vpack.c.bf16 %v476_v56, %v475_v55  ;;  %v478_v59 = vld [vmem:[%s3068_s12 + $0x18] sm:$0xff]  ;;  %v479_v2 = vld [vmem:[%s3068_s12 + $0x20] sm:$0xff]  ;;  %v480_v3 = vld [vmem:[%s3068_s12 + $0x28] sm:$0xff] }
  0x1e   : > { %v2708_v60 = vpack.c.bf16 %v478_v59, %v477_v58  ;;  %v2711_v5 = vpack.c.bf16 %v480_v3, %v479_v2 }
  0x22   : > { %2557 = vmatmul.mubr.msk.f32.vlgmr.msra.gmra.mrb[0].mxu1 %vm483_vm1, %v463_v11  ;;  %v481_v11 = vld [vmem:[%s3068_s12 + $0x30] sm:$0xff] }
  0x23   : > { %2571 = vmatmul.mubr.msk.f32.vlgmr.msra.gmra.mrb[0].mxu0 %vm483_vm1, %v465_v13  ;;  %2695 = vmatpush3.bf16.xpose.msk.msra.mxu1 %vm3025_vm2, %v2693_v12  ;;  %v482_v12 = vld [vmem:[%s3068_s12 + $0x38] sm:$0xff]  ;;  %s2398_s12 = sshll.u32 %s432_s30, 6 }
  0x24   : > { %2563 = vmatprep.mubr.msk.f32.mxu1 %vm2897_vm0, %v2898_v1  ;;  %2700 = vmatprep.subr.bf16.mxu1 %v2896_v0  ;;  %s3340_s13 = scalar_lea.vmem [#allocation2], %s2398_s12  ;;  %s2836_s12 = sshll.u32 %s2899_s29, 4  ;;  %s2837_s12 = int_to_ptr.vmem [resolvable:$false] %s2836_s12 }
  0x25   : > { %2584 = vmatprep.mubr.msk.f32.mxu0 %vm2897_vm0, %v2898_v1  ;;  %2706 = vmatpush3.bf16.msra.mxu0 %v2705_v57  ;;  %s2296_s15 = sshll.u32 %s3340_s13, 4  ;;  %s3366_s15 = int_to_ptr.vmem [resolvable:$true] %s2296_s15 }
  0x26   : > { %2710 = vmatprep.subr.bf16.mxu0 %v2896_v0  ;;  %s2832_s25 = scalar_lea.vmem %s3366_s15, 1024  ;;  %p2839_p0 = scmp.lt.s32.totalorder %s3366_s15, %s2837_s12 }
  0x27   : > { %p2833_p11 = scmp.ne.s32.totalorder %s3366_s15, %s2832_s25 }
  0x29   : > { %p2834_p12 = pnand %p2833_p11, %p3000_p5 }
  0x2a   : > { %2564 = vmatmul.mubr.msk.f32.vlgmr.msra.gmra.mrb[2].mxu1 %vm483_vm1, %v464_v16 }
  0x2b   : > { %2703 = vmatpush3.bf16.xpose.msk.msra.mxu1 %vm3025_vm2, %v2701_v17  ;;  %2577 = vmatprep.mubr.msk.f32.mxu1 %vm2897_vm0, %v2898_v1  ;;  %v2714_v17 = vpack.c.bf16 %v482_v12, %v481_v11  ;;  %p2835_p13 = pneg %p2834_p12 }
  0x2c   : > { %2707 = vmatprep.subr.bf16.mxu1 %v2896_v0 }
  0x32   : > { %2578 = vmatmul.mubr.msk.f32.vlgmr.msra.gmra.mrb[4].mxu1 %vm483_vm1, %v466_v18 }
  0x33   : > { %2591 = vmatprep.mubr.msk.f32.mxu1 %vm2897_vm0, %v2898_v1  ;;  %2709 = vmatpush3.bf16.msra.mxu1 %v2708_v60 }
  0x34   : > { %2713 = vmatprep.subr.bf16.mxu1 %v2896_v0 }
  0xf5   : > { %v559_v19 = vpop.f32.mrb[0].mxu1 }
  0xf6   : > { %v800_v20 = vmul.f32 0.17677669, %v559_v19  ;;  %v717_v21 = vpop.f32.mrb[0].mxu0  ;;  %v2558_v22 = vpop.f32.mrb[1].mxu1 }
  0xf7   : > { %v802_v23 = vmul.f32 0.17677669, %v717_v21  ;;  %v2572_v24 = vpop.f32.mrb[1].mxu0 }
  0xf8   : > { %v805_v25 = vsel %vm804_vm3, %v800_v20, -inf }
  0xf9   : > { %v811_v26 = vsel %vm804_vm3, %v802_v23, -inf  ;;  %806 = vmax.xlane.f32.xlu0 %v805_v25 }
  0xfa   : > { %812 = vmax.xlane.f32.xlu1 %v811_v26 }
  0xfd   : > { %v638_v27 = vpop.f32.mrb[2].mxu1 }
  0xfe   : > { %v801_v28 = vmul.f32 0.17677669, %v638_v27  ;;  %v2565_v29 = vpop.f32.mrb[3].mxu1 }
 0x100   : > { %v808_v30 = vsel %vm804_vm3, %v801_v28, -inf }
 0x101   : > { %809 = vmax.xlane.f32.xlu0 %v808_v30 }
 0x105   : > { %v796_v31 = vpop.f32.mrb[4].mxu1 }
 0x106   : > { %v803_v32 = vmul.f32 0.17677669, %v796_v31  ;;  %v2579_v33 = vpop.f32.mrb[5].mxu1 }
 0x108   : > { %v814_v34 = vsel %vm804_vm3, %v803_v32, -inf }
 0x109   : > { %815 = vmax.xlane.f32.xlu1 %v814_v34 }
 0x186   : > { %v807_v35 = vpop.xlane.xlu0 %806 }
 0x187   : > { %v813_v36 = vpop.xlane.xlu1 %812  ;;  %v817_v37 = vsub.f32 %v800_v20, %v807_v35  ;;  %v1173_v20 = vlaneseq }
 0x188   : > { %v819_v38 = vsub.f32 %v802_v23, %v813_v36 }
 0x189   : > { %v821_v39 = vmul.f32 1.442695, %v817_v37  ;;  %v1174_v27 = vshrl.u32 %v1173_v20, 7 }
 0x18a   : > { %v825_v40 = vmul.f32 1.442695, %v819_v38 }
 0x18b   : > { %2784 = vpow2.f32 %v821_v39 }
 0x18c   : > { %2786 = vpow2.f32 %v825_v40 }
 0x18e   : > { %v810_v41 = vpop.xlane.xlu0 %809 }
 0x18f   : > { %v818_v42 = vsub.f32 %v801_v28, %v810_v41 }
 0x191   : > { %v823_v43 = vmul.f32 1.442695, %v818_v42 }
 0x193   : > { %2788 = vpow2.f32 %v823_v43 }
 0x195   : > { %v2785_v44 = vpop.eup %2784 }
 0x196   : > { %v816_v45 = vpop.xlane.xlu1 %815  ;;  %v829_v46 = vsel %vm804_vm3, %v2785_v44, 0.0  ;;  %v2787_v47 = vpop.eup %2786 }
 0x197   : > { %v820_v48 = vsub.f32 %v803_v32, %v816_v45  ;;  %830 = vadd.xlane.f32.xlu0 %v829_v46  ;;  %v835_v50 = vsel %vm804_vm3, %v2787_v47, 0.0 }
 0x199   : > { %v827_v49 = vmul.f32 1.442695, %v820_v48 }
 0x19b   : > { %2790 = vpow2.f32 %v827_v49  ;;  %836 = vadd.xlane.f32.xlu0 %v835_v50 }
 0x19d   : > { %v2789_v51 = vpop.eup %2788 }
 0x19e   : > { %v832_v52 = vsel %vm804_vm3, %v2789_v51, 0.0 }
 0x19f   : > { %833 = vadd.xlane.f32.xlu1 %v832_v52 }
 0x1a5   : > { %v2791_v53 = vpop.eup %2790 }
 0x1a6   : > { %v838_v54 = vsel %vm804_vm3, %v2791_v53, 0.0 }
 0x1a7   : > { %839 = vadd.xlane.f32.xlu1 %v838_v54 }
 0x224   : > { %v831_v61 = vpop.xlane.xlu0 %830 }
 0x225   : > { %2792 = vrcp.f32 %v831_v61 }
 0x228   : > { %v837_v62 = vpop.xlane.xlu0 %836 }
 0x229   : > { %2794 = vrcp.f32 %v837_v62 }
 0x22c   : > { %v834_v63 = vpop.xlane.xlu1 %833 }
 0x22d   : > { %2796 = vrcp.f32 %v834_v63 }
 0x22f   : > { %v2793_v4 = vpop.eup %2792 }
 0x230   : > { %v849_v6 = vmul.f32 %v2793_v4, %v2785_v44 }
 0x232   : > { %v1145_v7 = vsel %vm804_vm3, %v849_v6, -inf  ;;  %2585 = vmatmul.mubr.msk.f32.vlgmr.msra.gmra.mrb[2].mxu0 %vm804_vm3, %v849_v6 }
 0x233   : > { %v2795_v8 = vpop.eup %2794  ;;  %v1146_v9 = vrot.slane %v1145_v7, 4  ;;  %2712 = vmatpush3.bf16.msra.mxu0 %v2711_v5  ;;  %2598 = vmatprep.mubr.msk.f32.mxu0 %vm2897_vm0, %v2898_v1 }
 0x234   : > { %v851_v0 = vmul.f32 %v2795_v8, %v2787_v47  ;;  %v840_v10 = vpop.xlane.xlu1 %839 }
 0x235   : > { %2798 = vrcp.f32 %v840_v10  ;;  %v1147_v13 = vmax.f32 %v1145_v7, %v1146_v9 }
 0x236   : > { %v1159_v14 = vsel %vm804_vm3, %v851_v0, -inf  ;;  %2599 = vmatmul.mubr.msk.f32.vlgmr.msra.gmra.mrb[4].mxu0 %vm804_vm3, %v851_v0 }
 0x237   : > { %v2797_v15 = vpop.eup %2796  ;;  %v1160_v16 = vrot.slane %v1159_v14, 4  ;;  %v1148_v18 = vrot.slane %v1147_v13, 2 }
 0x238   : > { %v850_v19 = vmul.f32 %v2797_v15, %v2789_v51  ;;  %v1224_v15 = vand.u32 127, %v1173_v20 }
 0x239   : > { %v1149_v21 = vmax.f32 %v1147_v13, %v1148_v18  ;;  %v1161_v22 = vmax.f32 %v1159_v14, %v1160_v16 }
 0x23a   : > { %v1152_v23 = vsel %vm804_vm3, %v850_v19, -inf  ;;  %2592 = vmatmul.mubr.msk.f32.vlgmr.msra.gmra.mrb[6].mxu1 %vm804_vm3, %v850_v19 }
 0x23b   : > { %v1153_v24 = vrot.slane %v1152_v23, 4  ;;  %2715 = vmatpush3.bf16.msra.mxu1 %v2714_v17  ;;  %2605 = vmatprep.mubr.msk.f32.mxu1 %vm2897_vm0, %v2898_v1  ;;  %v1150_v25 = vrot.slane %v1149_v21, 1  ;;  %v1162_v26 = vrot.slane %v1161_v22, 2 }
 0x23d   : > { %v1151_v28 = vmax.f32 %v1149_v21, %v1150_v25  ;;  %v1163_v29 = vmax.f32 %v1161_v22, %v1162_v26  ;;  %v1154_v30 = vmax.f32 %v1152_v23, %v1153_v24  ;;  %v1620_v25 = vld [vmem:[%s3421_s5] sm:$0xff]  ;;  %v1621_v26 = vld [vmem:[%s3421_s5 + $0x8] sm:$0xff] }
 0x23f   : > { %v2799_v31 = vpop.eup %2798  ;;  %vm1175_vm4 = vcmp.eq.f32.partialorder %v849_v6, %v1151_v28  ;;  %v1164_v32 = vrot.slane %v1163_v29, 1  ;;  %v1155_v33 = vrot.slane %v1154_v30, 2 }
 0x240   : > { %v852_v34 = vmul.f32 %v2799_v31, %v2791_v53  ;;  %v1179_v35 = vsel %vm1175_vm4, %v1174_v27, 8 }
 0x241   : > { %v1183_v36 = vsel %vm804_vm3, %v1179_v35, 2147483647  ;;  %v1165_v37 = vmax.f32 %v1163_v29, %v1164_v32  ;;  %v1156_v38 = vmax.f32 %v1154_v30, %v1155_v33  ;;  %v1622_v29 = vld [vmem:[%s3421_s5 + $0x10] sm:$0xff]  ;;  %v1623_v30 = vld [vmem:[%s3421_s5 + $0x18] sm:$0xff]  ;;  %v2716_v32 = vpack.c.bf16 %v1621_v26, %v1620_v25 }
 0x242   : > { %v1166_v39 = vsel %vm804_vm3, %v852_v34, -inf  ;;  %2606 = vmatmul.mubr.msk.f32.vlgmr.msra.gmra.mrb[8].mxu1 %vm804_vm3, %v852_v34  ;;  %v1184_v40 = vrot.slane %v1183_v36, 4 }
 0x243   : > { %v1167_v41 = vrot.slane %v1166_v39, 4  ;;  %vm1177_vm5 = vcmp.eq.f32.partialorder %v851_v0, %v1165_v37  ;;  %v1157_v42 = vrot.slane %v1156_v38, 1 }
 0x244   : > { %vm1185_vm6 = vcmp.lt.s32.totalorder %v1183_v36, %v1184_v40  ;;  %v1181_v43 = vsel %vm1177_vm5, %v1174_v27, 8 }
 0x245   : > { %v1186_v44 = vsel %vm1185_vm6, %v1183_v36, %v1184_v40  ;;  %v1203_v45 = vsel %vm804_vm3, %v1181_v43, 2147483647  ;;  %v1158_v46 = vmax.f32 %v1156_v38, %v1157_v42  ;;  %v1168_v47 = vmax.f32 %v1166_v39, %v1167_v41 }
 0x246   : > { %v1187_v48 = vrot.slane %v1186_v44, 2  ;;  %v1204_v49 = vrot.slane %v1203_v45, 4  ;;  %v2720_v36 = vpack.c.bf16 %v1623_v30, %v1622_v29 }
 0x247   : > { %vm1176_vm7 = vcmp.eq.f32.partialorder %v850_v19, %v1158_v46  ;;  %v1169_v50 = vrot.slane %v1168_v47, 2 }
 0x248   : > { %vm1188_vm8 = vcmp.lt.s32.totalorder %v1186_v44, %v1187_v48  ;;  %vm1205_vm9 = vcmp.lt.s32.totalorder %v1203_v45, %v1204_v49  ;;  %v1180_v51 = vsel %vm1176_vm7, %v1174_v27, 8 }
 0x249   : > { %v1189_v52 = vsel %vm1188_vm8, %v1186_v44, %v1187_v48  ;;  %v1206_v53 = vsel %vm1205_vm9, %v1203_v45, %v1204_v49  ;;  %v1193_v54 = vsel %vm804_vm3, %v1180_v51, 2147483647  ;;  %v1170_v55 = vmax.f32 %v1168_v47, %v1169_v50 }
 0x24a   : > { %v1190_v56 = vrot.slane %v1189_v52, 1  ;;  %v1207_v57 = vrot.slane %v1206_v53, 2  ;;  %v1194_v58 = vrot.slane %v1193_v54, 4 }
 0x24b   : > { %v1171_v59 = vrot.slane %v1170_v55, 1 }
 0x24c   : > { %vm1191_vm10 = vcmp.lt.s32.totalorder %v1189_v52, %v1190_v56  ;;  %vm1208_vm11 = vcmp.lt.s32.totalorder %v1206_v53, %v1207_v57  ;;  %vm1195_vm12 = vcmp.lt.s32.totalorder %v1193_v54, %v1194_v58 }
 0x24d   : > { %v1192_v60 = vsel %vm1191_vm10, %v1189_v52, %v1190_v56  ;;  %v1209_v61 = vsel %vm1208_vm11, %v1206_v53, %v1207_v57  ;;  %v1196_v62 = vsel %vm1195_vm12, %v1193_v54, %v1194_v58  ;;  %v1172_v63 = vmax.f32 %v1170_v55, %v1171_v59  ;;  %v1603_v53 = vld [vmem:[%s3139_s14 + $0x8] sm:$0xff]  ;;  %v1602_v55 = vld [vmem:[%s3139_s14] sm:$0xff] }
 0x24e   : > { %1226 = vbcast.lane.b32.xlu0 %v1192_v60, 256  ;;  %1230 = vbcast.lane.b32.xlu1 %v1192_v60, 264  ;;  %v1210_v2 = vrot.slane %v1209_v61, 1  ;;  %v1197_v3 = vrot.slane %v1196_v62, 2  ;;  %v1611_v54 = vld [vmem:[%s3420_s4 + $0x8] sm:$0xff]  ;;  %v1610_v56 = vld [vmem:[%s3420_s4] sm:$0xff] }
 0x24f   : > { %vm1178_vm13 = vcmp.eq.f32.partialorder %v852_v34, %v1172_v63  ;;  %v2442_v57 = vld [vmem:[%s3422_s6] ss:$0 sm:$0xff]  ;;  %v1613_v58 = vadd.f32 %v1611_v54, %v1603_v53  ;;  %v1612_v60 = vadd.f32 %v1610_v56, %v1602_v55 }
 0x250   : > { %vm1211_vm14 = vcmp.lt.s32.totalorder %v1209_v61, %v1210_v2  ;;  %vm1198_vm15 = vcmp.lt.s32.totalorder %v1196_v62, %v1197_v3  ;;  %v1182_v4 = vsel %vm1178_vm13, %v1174_v27, 8 }
 0x251   : > { %v1212_v5 = vsel %vm1211_vm14, %v1209_v61, %v1210_v2  ;;  %v1199_v6 = vsel %vm1198_vm15, %v1196_v62, %v1197_v3  ;;  %v1213_v7 = vsel %vm804_vm3, %v1182_v4, 2147483647  ;;  %vm1277_vm3 = vcmask 64512   ;;  %v1605_v4 = vld [vmem:[%s3139_s14 + $0x18] sm:$0xff] }
 0x252   : > { %1240 = vbcast.lane.b32.xlu0 %v1212_v5, 256  ;;  %v1200_v8 = vrot.slane %v1199_v6, 1  ;;  %v1214_v9 = vrot.slane %v1213_v7, 4 }
 0x254   : > { %vm1201_vm0 = vcmp.lt.s32.totalorder %v1199_v6, %v1200_v8  ;;  %vm1215_vm2 = vcmp.lt.s32.totalorder %v1213_v7, %v1214_v9 }
 0x255   : > { %v1202_v0 = vsel %vm1201_vm0, %v1199_v6, %v1200_v8  ;;  %v1216_v10 = vsel %vm1215_vm2, %v1213_v7, %v1214_v9  ;;  %v1604_v7 = vld [vmem:[%s3139_s14 + $0x10] sm:$0xff]  ;;  %v1615_v8 = vadd.f32 %v1611_v54, %v1605_v4 }
 0x256   : > { %1233 = vbcast.lane.b32.xlu1 %v1202_v0, 256  ;;  %v1217_v11 = vrot.slane %v1216_v10, 2 }
 0x258   : > { %vm1218_vm4 = vcmp.lt.s32.totalorder %v1216_v10, %v1217_v11 }
 0x259   : > { %v1219_v12 = vsel %vm1218_vm4, %v1216_v10, %v1217_v11 }
 0x25a   : > { %1237 = vbcast.lane.b32.xlu1 %v1202_v0, 264  ;;  %v1220_v13 = vrot.slane %v1219_v12, 1  ;;  %v1607_v0 = vld [vmem:[%s3139_s14 + $0x28] sm:$0xff] }
 0x25c   : > { %vm1221_vm5 = vcmp.lt.s32.totalorder %v1219_v12, %v1220_v13 }
 0x25d   : > { %v1222_v14 = vsel %vm1221_vm5, %v1219_v12, %v1220_v13  ;;  %v1614_v12 = vadd.f32 %v1610_v56, %v1604_v7 }
 0x25e   : > { %1244 = vbcast.lane.b32.xlu1 %v1212_v5, 264  ;;  %1247 = vbcast.lane.b32.xlu0 %v1222_v14, 256 }
 0x262   : > { %1251 = vbcast.lane.b32.xlu1 %v1222_v14, 264  ;;  %v1606_v14 = vld [vmem:[%s3139_s14 + $0x20] sm:$0xff] }
 0x2c0   : > { %v1227_v16 = vpop.permute.xlu0 %1226  ;;  %v1231_v17 = vpop.permute.xlu1 %1230 }
 0x2c1   : > { %vm1253_vm6 = vcmp.eq.s32.totalorder %v1227_v16, %v1224_v15  ;;  %vm1254_vm7 = vcmp.eq.s32.totalorder %v1231_v17, %v1224_v15  ;;  %v1617_v16 = vadd.f32 %v1611_v54, %v1607_v0 }
 0x2c2   : > { %v2426_v18 = vsel %vm1253_vm6, 1.0, %v2898_v1  ;;  %v2427_v28 = vsel %vm1254_vm7, 1.0, %v2898_v1 }
 0x2c3   : > { %2610 = vmatprep.mubr.msk.f32.mxu0 %vm1277_vm3, %v2426_v18  ;;  %v1609_v18 = vld [vmem:[%s3139_s14 + $0x38] sm:$0xff] }
 0x2c4   : > { %v1241_v23 = vpop.permute.xlu0 %1240 }
 0x2c5   : > { %vm1257_vm9 = vcmp.eq.s32.totalorder %v1241_v23, %v1224_v15 }
 0x2c6   : > { %v2430_v31 = vsel %vm1257_vm9, 1.0, %v2898_v1 }
 0x2c8   : > { %v1234_v19 = vpop.permute.xlu1 %1233 }
 0x2c9   : > { %vm1255_vm8 = vcmp.eq.s32.totalorder %v1234_v19, %v1224_v15 }
 0x2ca   : > { %v2428_v21 = vsel %vm1255_vm8, 1.0, %v2898_v1 }
 0x2cb   : > { %2615 = vmatprep.mubr.msk.f32.mxu1 %vm1277_vm3, %v2428_v21 }
 0x2cc   : > { %v1238_v22 = vpop.permute.xlu1 %1237 }
 0x2cd   : > { %vm1256_vm11 = vcmp.eq.s32.totalorder %v1238_v22, %v1224_v15 }
 0x2ce   : > { %v2429_v40 = vsel %vm1256_vm11, 1.0, %v2898_v1 }
 0x2d0   : > { %v1245_v24 = vpop.permute.xlu1 %1244  ;;  %v1248_v34 = vpop.permute.xlu0 %1247 }
 0x2d1   : > { %vm1258_vm10 = vcmp.eq.s32.totalorder %v1245_v24, %v1224_v15  ;;  %vm1259_vm12 = vcmp.eq.s32.totalorder %v1248_v34, %v1224_v15  ;;  %v1616_v24 = vadd.f32 %v1610_v56, %v1606_v14 }
 0x2d2   : > { %v2431_v37 = vsel %vm1258_vm10, 1.0, %v2898_v1  ;;  %v2432_v41 = vsel %vm1259_vm12, 1.0, %v2898_v1 }
 0x2d4   : > { %v1252_v42 = vpop.permute.xlu1 %1251 }
 0x2d5   : > { %vm1260_vm13 = vcmp.eq.s32.totalorder %v1252_v42, %v1224_v15 }
 0x2d6   : > { %v2433_v45 = vsel %vm1260_vm13, 1.0, %v2898_v1 }
 0x305   : > { %v922_v20 = vpop.f32.mrb[2].mxu0 }
 0x306   : > { %v2586_v27 = vpop.f32.mrb[3].mxu0  ;;  %2608 = vmatprep.subr.mxu0 %v922_v20 }
 0x307   : > { %2609 = vmatpush3.msra.mxu0 %v922_v20  ;;  %v1608_v20 = vld [vmem:[%s3139_s14 + $0x30] sm:$0xff]  ;;  %v1619_v27 = vadd.f32 %v1611_v54, %v1609_v18  ;;  %v1874_v18 = vld [vmem:[%s3423_s7 + $0x8] sm:$0xff]  ;;  %s2479_s14 = sshll.u32 %s2983_s21, 10  ;;  %s3375_s21 = scalar_lea.sflag [#allocation3], %s432_s30 }
 0x308   : > { %2611 = vmatmul.mubr.msk.f32.vlgmr.msra.gmra.mrb[6].mxu0 %vm1277_vm3, %v2427_v28  ;;  %v1618_v29 = vadd.f32 %v1610_v56, %v1608_v20  ;;  %v2022_v20 = vld [vmem:[%s3425_s9 + $0x8] sm:$0xff]  ;;  %s3364_s24 = scalar_lea.hbm %s3427_s11, %s2479_s14  ;;  %s2838_s14 = scalar_lea.vmem %s2837_s12, 2048 }
 0x309   : > { %v1068_v33 = vpop.f32.mrb[4].mxu0  ;;  %2620 = vmatprep.mubr.msk.f32.mxu0 %vm1277_vm3, %v2430_v31  ;;  %p2840_p1 = scmp.lt.s32.totalorder %s2838_s14, %s2832_s25 }
 0x30a   : > { %v2600_v35 = vpop.f32.mrb[5].mxu0  ;;  %2618 = vmatprep.subr.mxu0 %v1068_v33 }
 0x30b   : > { %2619 = vmatpush3.msra.mxu0 %v1068_v33  ;;  %p2841_p2 = por %p2840_p1, %p2839_p0 }
 0x30c   : > { %2621 = vmatmul.mubr.msk.f32.vlgmr.msra.gmra.mrb[8].mxu0 %vm1277_vm3, %v2431_v37  ;;  %2717 = vmatprep.subr.bf16.mxu0 %v2716_v32 }
 0x30d   : > { %v995_v38 = vpop.f32.mrb[6].mxu1  ;;  %2719 = vmatpush3.bf16.msra.mxu0 %v2716_v32  ;;  %p2842_p3 = pnand %p2841_p2, %p2835_p13 }
 0x30e   : > { %v2593_v39 = vpop.f32.mrb[7].mxu1  ;;  %2613 = vmatprep.subr.mxu1 %v995_v38  ;;  %2721 = vmatprep.subr.bf16.mxu0 %v2720_v36 }
 0x30f   : > { %2614 = vmatpush3.msra.mxu1 %v995_v38 }
 0x310   : > { %2616 = vmatmul.mubr.msk.f32.vlgmr.msra.gmra.mrb[10].mxu1 %vm1277_vm3, %v2429_v40 }
 0x311   : > { %2625 = vmatprep.mubr.msk.f32.mxu1 %vm1277_vm3, %v2432_v41  ;;  %2723 = vmatpush3.bf16.msra.mxu0 %v2720_v36 }
 0x315   : > { %v1141_v43 = vpop.f32.mrb[8].mxu1 }
 0x316   : > { %v2607_v44 = vpop.f32.mrb[9].mxu1  ;;  %2623 = vmatprep.subr.mxu1 %v1141_v43 }
 0x317   : > { %2624 = vmatpush3.msra.mxu1 %v1141_v43 }
 0x318   : > { %2626 = vmatmul.mubr.msk.f32.vlgmr.msra.gmra.mrb[12].mxu1 %vm1277_vm3, %v2433_v45 }
 0x3db   : > { %v2612_v46 = vpop.f32.mrb[6].mxu0 }
 0x3dc   : > { %v1350_v47 = vpop.f32.mrb[7].mxu0 }
 0x3dd   : > { %2636 = vmatprep.mubr.msk.f32.mxu0 %vm483_vm1, %v1350_v47 }
 0x3de   : > { %2637 = vmatmul.mubr.msk.f32.vlgmr.msra.gmra.mrb[10].mxu0 %vm483_vm1, %v2612_v46 }
 0x3df   : > { %v2622_v48 = vpop.f32.mrb[8].mxu0 }
 0x3e0   : > { %v1512_v49 = vpop.f32.mrb[9].mxu0 }
 0x3e3   : > { %v2617_v50 = vpop.f32.mrb[10].mxu1 }
 0x3e4   : > { %v1431_v51 = vpop.f32.mrb[11].mxu1 }
 0x3e5   : > { %2639 = vmatprep.mubr.msk.f32.mxu0 %vm483_vm1, %v1431_v51 }
 0x3e6   : > { %2640 = vmatmul.mubr.msk.f32.gmra.mrb[12].mxu0 %vm483_vm1, %v2617_v50 }
 0x3e7   : > { %2642 = vmatprep.mubr.msk.f32.mxu0 %vm483_vm1, %v1512_v49 }
 0x3ea   : > { %2643 = vmatmul.mubr.msk.f32.gmra.mrb[14].mxu0 %vm483_vm1, %v2622_v48 }
 0x3eb   : > { %v2627_v1 = vpop.f32.mrb[12].mxu1 }
 0x3ec   : > { %v1593_v52 = vpop.f32.mrb[13].mxu1 }
 0x3ed   : > { %2645 = vmatprep.mubr.msk.f32.mxu0 %vm483_vm1, %v1593_v52 }
 0x3ee   : > { %2646 = vmatmul.mubr.msk.f32.gmra.mrb[16].mxu0 %vm483_vm1, %v2627_v1 }
 0x4b1   : > { %v2638_v59 = vpop.f32.mrb[10].mxu0 }
 0x4b2   : > { %v1727_v61 = vadd.f32 %v2638_v59, %v2442_v57  ;;  %v1721_v62 = vpop.f32.mrb[11].mxu0 }
 0x4b3   : > { %v1722_v63 = vadd.f32 %v2442_v57, %v1721_v62 }
 0x4b4   : > { %v1761_v2 = vadd.f32 %v1727_v61, %v1613_v58 }
 0x4b5   : > { %v1760_v3 = vadd.f32 %v1722_v63, %v1612_v60 }
 0x4b6   : > { %v1771_v5 = vsel %vm483_vm1, %v1761_v2, 0.0 }
 0x4b7   : > { %1772 = vadd.xlane.f32.xlu1 %v1771_v5  ;;  %v1768_v6 = vsel %vm483_vm1, %v1760_v3, 0.0 }
 0x4b8   : > { %1769 = vadd.xlane.f32.xlu0 %v1768_v6 }
 0x4b9   : > { %v2641_v9 = vpop.f32.mrb[12].mxu0 }
 0x4ba   : > { %v1737_v10 = vadd.f32 %v2641_v9, %v2442_v57  ;;  %v1731_v11 = vpop.f32.mrb[13].mxu0 }
 0x4bb   : > { %v1732_v13 = vadd.f32 %v2442_v57, %v1731_v11 }
 0x4bc   : > { %v1763_v15 = vadd.f32 %v1737_v10, %v1615_v8 }
 0x4bd   : > { %v2644_v17 = vpop.f32.mrb[14].mxu0  ;;  %v1762_v23 = vadd.f32 %v1732_v13, %v1614_v12 }
 0x4be   : > { %v1747_v19 = vadd.f32 %v2644_v17, %v2442_v57  ;;  %v1741_v21 = vpop.f32.mrb[15].mxu0  ;;  %v1777_v22 = vsel %vm483_vm1, %v1763_v15, 0.0  ;;  %v1873_v17 = vld [vmem:[%s3423_s7] sm:$0xff] }
 0x4bf   : > { %v1742_v25 = vadd.f32 %v2442_v57, %v1741_v21  ;;  %1778 = vadd.xlane.f32.xlu0 %v1777_v22  ;;  %v1774_v33 = vsel %vm483_vm1, %v1762_v23, 0.0  ;;  %v1875_v21 = vld [vmem:[%s3423_s7 + $0x10] sm:$0xff]  ;;  %v1876_v22 = vld [vmem:[%s3423_s7 + $0x18] sm:$0xff] }
 0x4c0   : > { %v1765_v26 = vadd.f32 %v1747_v19, %v1617_v16  ;;  %v2724_v19 = vpack.c.bf16 %v1874_v18, %v1873_v17 }
 0x4c1   : > { %v2647_v28 = vpop.f32.mrb[16].mxu0  ;;  %v1764_v34 = vadd.f32 %v1742_v25, %v1616_v24  ;;  %v2021_v24 = vld [vmem:[%s3425_s9] sm:$0xff] }
 0x4c2   : > { %v1757_v30 = vadd.f32 %v2647_v28, %v2442_v57  ;;  %v1751_v31 = vpop.f32.mrb[17].mxu0  ;;  %v1783_v32 = vsel %vm483_vm1, %v1765_v26, 0.0  ;;  %2725 = vmatprep.subr.bf16.mxu1 %v2724_v19  ;;  %v2732_v25 = vpack.c.bf16 %v2022_v20, %v2021_v24 }
 0x4c3   : > { %v1752_v35 = vadd.f32 %v2442_v57, %v1751_v31  ;;  %1784 = vadd.xlane.f32.xlu1 %v1783_v32  ;;  %1775 = vadd.xlane.f32.xlu0 %v1774_v33  ;;  %v1780_v37 = vsel %vm483_vm1, %v1764_v34, 0.0 }
 0x4c4   : > { %v1767_v36 = vadd.f32 %v1757_v30, %v1619_v27  ;;  %2727 = vmatpush3.bf16.msra.mxu1 %v2724_v19  ;;  %2733 = vmatprep.subr.bf16.mxu0 %v2732_v25 }
 0x4c5   : > { %v1766_v39 = vadd.f32 %v1752_v35, %v1618_v29  ;;  %2735 = vmatpush3.bf16.msra.mxu0 %v2732_v25 }
 0x4c6   : > { %v1789_v38 = vsel %vm483_vm1, %v1767_v36, 0.0 }
 0x4c7   : > { %1781 = vadd.xlane.f32.xlu0 %v1780_v37  ;;  %1790 = vadd.xlane.f32.xlu1 %v1789_v38  ;;  %v1786_v40 = vsel %vm483_vm1, %v1766_v39, 0.0 }
 0x4cb   : > { %1787 = vadd.xlane.f32.xlu0 %v1786_v40 }
 0x544   : > { %v1773_v41 = vpop.xlane.xlu1 %1772 }
 0x545   : > { %v1794_v42 = vmul.f32 0.03125, %v1773_v41  ;;  %v1770_v43 = vpop.xlane.xlu0 %1769 }
 0x546   : > { %v1793_v44 = vmul.f32 0.03125, %v1770_v43 }
 0x547   : > { %v3166_v45 = vsub.f32 %v1761_v2, %v1794_v42 }
 0x548   : > { %v3168_v46 = vsub.f32 %v1760_v3, %v1793_v44 }
 0x549   : > { %v1810_v47 = vmul.f32 %v3166_v45, %v3166_v45 }
 0x54a   : > { %v1809_v48 = vmul.f32 %v3168_v46, %v3168_v46 }
 0x54b   : > { %v1820_v49 = vsel %vm483_vm1, %v1810_v47, 0.0 }
 0x54c   : > { %v1779_v50 = vpop.xlane.xlu0 %1778  ;;  %1821 = vadd.xlane.f32.xlu1 %v1820_v49  ;;  %v1817_v51 = vsel %vm483_vm1, %v1809_v48, 0.0 }
 0x54d   : > { %v1796_v1 = vmul.f32 0.03125, %v1779_v50  ;;  %1818 = vadd.xlane.f32.xlu0 %v1817_v51 }
 0x54f   : > { %v3176_v52 = vsub.f32 %v1763_v15, %v1796_v1 }
 0x550   : > { %v1785_v53 = vpop.xlane.xlu1 %1784  ;;  %v1776_v54 = vpop.xlane.xlu0 %1775 }
 0x551   : > { %v1798_v55 = vmul.f32 0.03125, %v1785_v53  ;;  %v1795_v56 = vmul.f32 0.03125, %v1776_v54  ;;  %v1812_v57 = vmul.f32 %v3176_v52, %v3176_v52 }
 0x553   : > { %v3180_v58 = vsub.f32 %v1765_v26, %v1798_v55  ;;  %v3182_v59 = vsub.f32 %v1762_v23, %v1795_v56  ;;  %v1826_v60 = vsel %vm483_vm1, %v1812_v57, 0.0  ;;  %v2728_v23 = vpack.c.bf16 %v1876_v22, %v1875_v21 }
 0x554   : > { %v1782_v61 = vpop.xlane.xlu0 %1781  ;;  %1827 = vadd.xlane.f32.xlu1 %v1826_v60  ;;  %v1791_v62 = vpop.xlane.xlu1 %1790 }
 0x555   : > { %v1797_v63 = vmul.f32 0.03125, %v1782_v61  ;;  %v1800_v2 = vmul.f32 0.03125, %v1791_v62  ;;  %v1814_v3 = vmul.f32 %v3180_v58, %v3180_v58  ;;  %v1811_v4 = vmul.f32 %v3182_v59, %v3182_v59  ;;  %2729 = vmatprep.subr.bf16.mxu1 %v2728_v23 }
 0x556   : > { %2731 = vmatpush3.bf16.msra.mxu1 %v2728_v23 }
 0x557   : > { %v3189_v5 = vsub.f32 %v1764_v34, %v1797_v63  ;;  %v3191_v6 = vsub.f32 %v1767_v36, %v1800_v2  ;;  %v1832_v7 = vsel %vm483_vm1, %v1814_v3, 0.0  ;;  %v1823_v8 = vsel %vm483_vm1, %v1811_v4, 0.0  ;;  %v2024_v4 = vld [vmem:[%s3425_s9 + $0x18] sm:$0xff] }
 0x558   : > { %1833 = vadd.xlane.f32.xlu1 %v1832_v7  ;;  %1824 = vadd.xlane.f32.xlu0 %v1823_v8  ;;  %v1788_v9 = vpop.xlane.xlu0 %1787  ;;  %v2451_v7 = vld [vmem:[%s3424_s8] ss:$0 sm:$0xff] }
 0x559   : > { %v1799_v0 = vmul.f32 0.03125, %v1788_v9  ;;  %v1816_v10 = vmul.f32 %v3191_v6, %v3191_v6  ;;  %v1813_v11 = vmul.f32 %v3189_v5, %v3189_v5 }
 0x55b   : > { %v3199_v12 = vsub.f32 %v1766_v39, %v1799_v0  ;;  %v1838_v13 = vsel %vm483_vm1, %v1816_v10, 0.0  ;;  %v1829_v14 = vsel %vm483_vm1, %v1813_v11, 0.0 }
 0x55c   : > { %1839 = vadd.xlane.f32.xlu1 %v1838_v13  ;;  %1830 = vadd.xlane.f32.xlu0 %v1829_v14 }
 0x55d   : > { %v1815_v15 = vmul.f32 %v3199_v12, %v3199_v12 }
 0x55f   : > { %v1835_v16 = vsel %vm483_vm1, %v1815_v15, 0.0 }
 0x560   : > { %1836 = vadd.xlane.f32.xlu0 %v1835_v16 }
 0x5d9   : > { %v1822_v26 = vpop.xlane.xlu1 %1821 }
 0x5da   : > { %v1842_v27 = vmul.f32 0.03125, %v1822_v26  ;;  %v1819_v28 = vpop.xlane.xlu0 %1818 }
 0x5db   : > { %v1841_v29 = vmul.f32 0.03125, %v1819_v28 }
 0x5dc   : > { %v1850_v30 = vadd.f32 1e-05, %v1842_v27 }
 0x5dd   : > { %v1849_v31 = vadd.f32 1e-05, %v1841_v29 }
 0x5de   : > { %2800 = vrsqrt.f32 %v1850_v30  ;;  %v2460_v30 = vld [vmem:[%s3426_s10] ss:$0 sm:$0xff] }
 0x5df   : > { %2802 = vrsqrt.f32 %v1849_v31 }
 0x5e1   : > { %v1828_v32 = vpop.xlane.xlu1 %1827 }
 0x5e2   : > { %v1844_v33 = vmul.f32 0.03125, %v1828_v32 }
 0x5e4   : > { %v1852_v34 = vadd.f32 1e-05, %v1844_v33 }
 0x5e5   : > { %v1834_v35 = vpop.xlane.xlu1 %1833  ;;  %v1825_v36 = vpop.xlane.xlu0 %1824 }
 0x5e6   : > { %v1846_v37 = vmul.f32 0.03125, %v1834_v35  ;;  %v1843_v38 = vmul.f32 0.03125, %v1825_v36  ;;  %2804 = vrsqrt.f32 %v1852_v34 }
 0x5e8   : > { %v2801_v39 = vpop.eup %2800  ;;  %v1851_v40 = vadd.f32 1e-05, %v1843_v38  ;;  %v1854_v44 = vadd.f32 1e-05, %v1846_v37 }
 0x5e9   : > { %v2803_v41 = vpop.eup %2802  ;;  %v1840_v42 = vpop.xlane.xlu1 %1839  ;;  %v3228_v50 = vmul.f32 %v2801_v39, %v3166_v45 }
 0x5ea   : > { %v1831_v43 = vpop.xlane.xlu0 %1830  ;;  %v1848_v47 = vmul.f32 0.03125, %v1840_v42  ;;  %v3225_v49 = vmul.f32 %v2803_v41, %v3168_v46  ;;  %2806 = vrsqrt.f32 %v1851_v40 }
 0x5eb   : > { %v1845_v48 = vmul.f32 0.03125, %v1831_v43  ;;  %2808 = vrsqrt.f32 %v1854_v44 }
 0x5ec   : > { %2656 = vmatprep.mubr.msk.f32.mxu1 %vm483_vm1, %v3225_v49  ;;  %v1856_v1 = vadd.f32 1e-05, %v1848_v47 }
 0x5ed   : > { %v1853_v51 = vadd.f32 1e-05, %v1845_v48  ;;  %2657 = vmatmul.mubr.msk.f32.vlgmr.msra.gmra.mrb[14].mxu1 %vm483_vm1, %v3228_v50 }
 0x5ee   : > { %v1837_v53 = vpop.xlane.xlu0 %1836 }
 0x5ef   : > { %v1847_v54 = vmul.f32 0.03125, %v1837_v53  ;;  %2810 = vrsqrt.f32 %v1853_v51 }
 0x5f0   : > { %2812 = vrsqrt.f32 %v1856_v1  ;;  %v2805_v46 = vpop.eup %2804 }
 0x5f1   : > { %v1855_v55 = vadd.f32 1e-05, %v1847_v54  ;;  %v3238_v57 = vmul.f32 %v2805_v46, %v3176_v52 }
 0x5f3   : > { %2814 = vrsqrt.f32 %v1855_v55 }
 0x5f4   : > { %v2807_v56 = vpop.eup %2806 }
 0x5f5   : > { %v3235_v45 = vmul.f32 %v2807_v56, %v3182_v59  ;;  %v2809_v60 = vpop.eup %2808 }
 0x5f6   : > { %v3248_v2 = vmul.f32 %v2809_v60, %v3180_v58  ;;  %v2023_v58 = vld [vmem:[%s3425_s9 + $0x10] sm:$0xff] }
 0x5f7   : > { %2659 = vmatprep.mubr.msk.f32.mxu1 %vm483_vm1, %v3235_v45 }
 0x5f8   : > { %2660 = vmatmul.mubr.msk.f32.gmra.mrb[16].mxu1 %vm483_vm1, %v3238_v57 }
 0x5f9   : > { %v2811_v61 = vpop.eup %2810 }
 0x5fa   : > { %v3245_v62 = vmul.f32 %v2811_v61, %v3189_v5  ;;  %v2813_v63 = vpop.eup %2812  ;;  %v2736_v5 = vpack.c.bf16 %v2024_v4, %v2023_v58 }
 0x5fb   : > { %v3260_v3 = vmul.f32 %v2813_v63, %v3191_v6 }
 0x5fc   : > { %2662 = vmatprep.mubr.msk.f32.mxu1 %vm483_vm1, %v3245_v62  ;;  %2737 = vmatprep.subr.bf16.mxu0 %v2736_v5 }
 0x5fd   : > { %v2815_v59 = vpop.eup %2814  ;;  %2663 = vmatmul.mubr.msk.f32.gmra.mrb[18].mxu1 %vm483_vm1, %v3248_v2  ;;  %2739 = vmatpush3.bf16.msra.mxu0 %v2736_v5 }
 0x5fe   : > { %v3255_v52 = vmul.f32 %v2815_v59, %v3199_v12 }
 0x600   : > { %2665 = vmatprep.mubr.msk.f32.mxu1 %vm483_vm1, %v3255_v52 }
 0x601   : > { %2666 = vmatmul.mubr.msk.f32.gmra.mrb[20].mxu1 %vm483_vm1, %v3260_v3 }
 0x6c0   : > { %v2658_v6 = vpop.f32.mrb[14].mxu1 }
 0x6c1   : > { %v1980_v8 = vadd.f32 %v2658_v6, %v2451_v7  ;;  %v1974_v9 = vpop.f32.mrb[15].mxu1 }
 0x6c2   : > { %v1975_v0 = vadd.f32 %v2451_v7, %v1974_v9 }
 0x6c3   : > { %v2014_v11 = vmax.f32 %v1980_v8, 0.0 }
 0x6c4   : > { %v2013_v10 = vmax.f32 %v1975_v0, 0.0 }
 0x6c6   : > { %2676 = vmatprep.mubr.msk.f32.mxu0 %vm483_vm1, %v2013_v10 }
 0x6c7   : > { %2677 = vmatmul.mubr.msk.f32.vlgmr.msra.gmra.mrb[18].mxu0 %vm483_vm1, %v2014_v11 }
 0x6cb   : > { %v2661_v12 = vpop.f32.mrb[16].mxu1 }
 0x6cc   : > { %v1990_v13 = vadd.f32 %v2661_v12, %v2451_v7  ;;  %v1984_v14 = vpop.f32.mrb[17].mxu1 }
 0x6cd   : > { %v1985_v15 = vadd.f32 %v2451_v7, %v1984_v14 }
 0x6ce   : > { %v2016_v18 = vmax.f32 %v1990_v13, 0.0 }
 0x6cf   : > { %v2015_v16 = vmax.f32 %v1985_v15, 0.0 }
 0x6d0   : > { %v2664_v17 = vpop.f32.mrb[18].mxu1 }
 0x6d1   : > { %v2000_v19 = vadd.f32 %v2664_v17, %v2451_v7  ;;  %v1994_v21 = vpop.f32.mrb[19].mxu1  ;;  %2679 = vmatprep.mubr.msk.f32.mxu0 %vm483_vm1, %v2015_v16 }
 0x6d2   : > { %v1995_v22 = vadd.f32 %v2451_v7, %v1994_v21  ;;  %2680 = vmatmul.mubr.msk.f32.gmra.mrb[20].mxu0 %vm483_vm1, %v2016_v18 }
 0x6d3   : > { %v2018_v20 = vmax.f32 %v2000_v19, 0.0 }
 0x6d4   : > { %v2017_v23 = vmax.f32 %v1995_v22, 0.0  ;;  %v2667_v24 = vpop.f32.mrb[20].mxu1 }
 0x6d5   : > { %v2010_v25 = vadd.f32 %v2667_v24, %v2451_v7  ;;  %v2004_v26 = vpop.f32.mrb[21].mxu1 }
 0x6d6   : > { %v2005_v27 = vadd.f32 %v2451_v7, %v2004_v26  ;;  %2682 = vmatprep.mubr.msk.f32.mxu0 %vm483_vm1, %v2017_v23 }
 0x6d7   : > { %2683 = vmatmul.mubr.msk.f32.gmra.mrb[22].mxu0 %vm483_vm1, %v2018_v20  ;;  %v2020_v29 = vmax.f32 %v2010_v25, 0.0 }
 0x6d8   : > { %v2019_v28 = vmax.f32 %v2005_v27, 0.0 }
 0x6da   : > { %2685 = vmatprep.mubr.msk.f32.mxu0 %vm483_vm1, %v2019_v28 }
 0x6db   : > { %2686 = vmatmul.mubr.msk.f32.gmra.mrb[24].mxu0 %vm483_vm1, %v2020_v29 }
 0x79a   : > { %v2678_v31 = vpop.f32.mrb[18].mxu0 }
 0x79b   : > { %v2128_v32 = vadd.f32 %v2678_v31, %v2460_v30  ;;  %v2122_v33 = vpop.f32.mrb[19].mxu0 }
 0x79c   : > { %v2123_v34 = vadd.f32 %v2460_v30, %v2122_v33 }
 0x79d   : > { %v2162_v35 = vadd.f32 %v2128_v32, %v3228_v50 }
 0x79e   : > { %v2161_v36 = vadd.f32 %v2123_v34, %v3225_v49 }
 0x79f   : > { %v2172_v37 = vsel %vm483_vm1, %v2162_v35, 0.0 }
 0x7a0   : > { %2173 = vadd.xlane.f32.xlu1 %v2172_v37  ;;  %v2169_v38 = vsel %vm483_vm1, %v2161_v36, 0.0 }
 0x7a1   : > { %2170 = vadd.xlane.f32.xlu0 %v2169_v38 }
 0x7a5   : > { %v2681_v39 = vpop.f32.mrb[20].mxu0 }
 0x7a6   : > { %v2138_v40 = vadd.f32 %v2681_v39, %v2460_v30  ;;  %v2132_v41 = vpop.f32.mrb[21].mxu0 }
 0x7a7   : > { %v2133_v42 = vadd.f32 %v2460_v30, %v2132_v41 }
 0x7a8   : > { %v2164_v43 = vadd.f32 %v2138_v40, %v3238_v57 }
 0x7a9   : > { %v2163_v47 = vadd.f32 %v2133_v42, %v3235_v45 }
 0x7aa   : > { %v2684_v44 = vpop.f32.mrb[22].mxu0  ;;  %v2178_v50 = vsel %vm483_vm1, %v2164_v43, 0.0 }
 0x7ab   : > { %v2148_v48 = vadd.f32 %v2684_v44, %v2460_v30  ;;  %v2142_v51 = vpop.f32.mrb[23].mxu0  ;;  %2179 = vadd.xlane.f32.xlu1 %v2178_v50  ;;  %v2175_v1 = vsel %vm483_vm1, %v2163_v47, 0.0 }
 0x7ac   : > { %v2143_v49 = vadd.f32 %v2460_v30, %v2142_v51  ;;  %2176 = vadd.xlane.f32.xlu0 %v2175_v1 }
 0x7ad   : > { %v2166_v53 = vadd.f32 %v2148_v48, %v3248_v2 }
 0x7ae   : > { %v2687_v54 = vpop.f32.mrb[24].mxu0  ;;  %v2165_v55 = vadd.f32 %v2143_v49, %v3245_v62 }
 0x7af   : > { %v2158_v46 = vadd.f32 %v2687_v54, %v2460_v30  ;;  %v2152_v56 = vpop.f32.mrb[25].mxu0  ;;  %v2184_v57 = vsel %vm483_vm1, %v2166_v53, 0.0 }
 0x7b0   : > { %v2153_v60 = vadd.f32 %v2460_v30, %v2152_v56  ;;  %2185 = vadd.xlane.f32.xlu1 %v2184_v57  ;;  %v2181_v45 = vsel %vm483_vm1, %v2165_v55, 0.0 }
 0x7b1   : > { %2182 = vadd.xlane.f32.xlu0 %v2181_v45  ;;  %v2168_v61 = vadd.f32 %v2158_v46, %v3260_v3 }
 0x7b2   : > { %v2167_v63 = vadd.f32 %v2153_v60, %v3255_v52 }
 0x7b3   : > { %v2190_v59 = vsel %vm483_vm1, %v2168_v61, 0.0 }
 0x7b4   : > { %2191 = vadd.xlane.f32.xlu1 %v2190_v59  ;;  %v2187_v2 = vsel %vm483_vm1, %v2167_v63, 0.0 }
 0x7b5   : > { %2188 = vadd.xlane.f32.xlu0 %v2187_v2 }
 0x82d   : > { %v2174_v62 = vpop.xlane.xlu1 %2173 }
 0x82e   : > { %v2194_v58 = vmul.f32 0.03125, %v2174_v62  ;;  %v2171_v4 = vpop.xlane.xlu0 %2170 }
 0x82f   : > { %v2193_v5 = vmul.f32 0.03125, %v2171_v4 }
 0x830   : > { %v2202_v7 = vsub.f32 %v2162_v35, %v2194_v58 }
 0x831   : > { %v3300_v6 = vsub.f32 %v2161_v36, %v2193_v5 }
 0x832   : > { %v2210_v8 = vmul.f32 %v2202_v7, %v2202_v7 }
 0x833   : > { %v2209_v9 = vmul.f32 %v3300_v6, %v3300_v6 }
 0x834   : > { %v2220_v3 = vsel %vm483_vm1, %v2210_v8, 0.0 }
 0x835   : > { %2221 = vadd.xlane.f32.xlu1 %v2220_v3  ;;  %v2217_v52 = vsel %vm483_vm1, %v2209_v9, 0.0 }
 0x836   : > { %2218 = vadd.xlane.f32.xlu0 %v2217_v52 }
 0x838   : > { %v2180_v0 = vpop.xlane.xlu1 %2179 }
 0x839   : > { %v2196_v10 = vmul.f32 0.03125, %v2180_v0  ;;  %v2177_v11 = vpop.xlane.xlu0 %2176 }
 0x83a   : > { %v2195_v12 = vmul.f32 0.03125, %v2177_v11 }
 0x83b   : > { %v3306_v13 = vsub.f32 %v2164_v43, %v2196_v10 }
 0x83c   : > { %v3308_v14 = vsub.f32 %v2163_v47, %v2195_v12 }
 0x83d   : > { %v2186_v15 = vpop.xlane.xlu1 %2185  ;;  %v2212_v18 = vmul.f32 %v3306_v13, %v3306_v13 }
 0x83e   : > { %v2198_v16 = vmul.f32 0.03125, %v2186_v15  ;;  %v2183_v17 = vpop.xlane.xlu0 %2182  ;;  %v2211_v21 = vmul.f32 %v3308_v14, %v3308_v14 }
 0x83f   : > { %v2197_v19 = vmul.f32 0.03125, %v2183_v17  ;;  %v2226_v23 = vsel %vm483_vm1, %v2212_v18, 0.0 }
 0x840   : > { %v3314_v22 = vsub.f32 %v2166_v53, %v2198_v16  ;;  %2227 = vadd.xlane.f32.xlu1 %v2226_v23  ;;  %v2223_v25 = vsel %vm483_vm1, %v2211_v21, 0.0 }
 0x841   : > { %v3317_v24 = vsub.f32 %v2165_v55, %v2197_v19  ;;  %v2192_v20 = vpop.xlane.xlu1 %2191  ;;  %2224 = vadd.xlane.f32.xlu0 %v2223_v25 }
 0x842   : > { %v2200_v26 = vmul.f32 0.03125, %v2192_v20  ;;  %v2189_v27 = vpop.xlane.xlu0 %2188  ;;  %v2214_v28 = vmul.f32 %v3314_v22, %v3314_v22 }
 0x843   : > { %v2199_v29 = vmul.f32 0.03125, %v2189_v27  ;;  %v2213_v30 = vmul.f32 %v3317_v24, %v3317_v24 }
 0x844   : > { %v3324_v31 = vsub.f32 %v2168_v61, %v2200_v26  ;;  %v2232_v32 = vsel %vm483_vm1, %v2214_v28, 0.0 }
 0x845   : > { %v3327_v33 = vsub.f32 %v2167_v63, %v2199_v29  ;;  %2233 = vadd.xlane.f32.xlu1 %v2232_v32  ;;  %v2229_v34 = vsel %vm483_vm1, %v2213_v30, 0.0 }
 0x846   : > { %2230 = vadd.xlane.f32.xlu0 %v2229_v34  ;;  %v2216_v35 = vmul.f32 %v3324_v31, %v3324_v31 }
 0x847   : > { %v2215_v36 = vmul.f32 %v3327_v33, %v3327_v33 }
 0x848   : > { %v2238_v37 = vsel %vm483_vm1, %v2216_v35, 0.0 }
 0x849   : > { %2239 = vadd.xlane.f32.xlu1 %v2238_v37  ;;  %v2235_v38 = vsel %vm483_vm1, %v2215_v36, 0.0 }
 0x84a   : > { %2236 = vadd.xlane.f32.xlu0 %v2235_v38 }
 0x8c2   : > { %v2222_v39 = vpop.xlane.xlu1 %2221 }
 0x8c3   : > { %v2242_v40 = vmul.f32 0.03125, %v2222_v39  ;;  %v2219_v41 = vpop.xlane.xlu0 %2218 }
 0x8c4   : > { %v2241_v42 = vmul.f32 0.03125, %v2219_v41 }
 0x8c5   : > { %v2250_v43 = vadd.f32 1e-05, %v2242_v40 }
 0x8c6   : > { %v2249_v44 = vadd.f32 1e-05, %v2241_v42 }
 0x8c7   : > { %2816 = vrsqrt.f32 %v2250_v43 }
 0x8c8   : > { %2818 = vrsqrt.f32 %v2249_v44 }
 0x8cd   : > { %v2228_v47 = vpop.xlane.xlu1 %2227 }
 0x8ce   : > { %v2244_v48 = vmul.f32 0.03125, %v2228_v47  ;;  %v2225_v51 = vpop.xlane.xlu0 %2224 }
 0x8cf   : > { %v2243_v50 = vmul.f32 0.03125, %v2225_v51 }
 0x8d0   : > { %v2252_v1 = vadd.f32 1e-05, %v2244_v48 }
 0x8d1   : > { %v2817_v49 = vpop.eup %2816  ;;  %v2251_v55 = vadd.f32 1e-05, %v2243_v50 }
 0x8d2   : > { %v2819_v53 = vpop.eup %2818  ;;  %v2266_v54 = vmul.f32 %v2817_v49, %v2202_v7  ;;  %v2234_v46 = vpop.xlane.xlu1 %2233  ;;  %2820 = vrsqrt.f32 %v2252_v1 }
 0x8d3   : > { %v2265_v56 = vmul.f32 %v2819_v53, %v3300_v6  ;;  %v2246_v57 = vmul.f32 0.03125, %v2234_v46  ;;  %v2231_v60 = vpop.xlane.xlu0 %2230  ;;  %2822 = vrsqrt.f32 %v2251_v55 }
 0x8d4   : > { %2274 = vst.msk [vmem:[%s3340_s13 + $0x8] sm:$0xff] %vm483_vm1, %v2266_v54  ;;  %v2245_v45 = vmul.f32 0.03125, %v2231_v60 }
 0x8d5   : > { %2273 = vst.msk [vmem:[%s3340_s13] sm:$0xff] %vm483_vm1, %v2265_v56  ;;  %v2254_v61 = vadd.f32 1e-05, %v2246_v57 }
 0x8d6   : > { %v2253_v63 = vadd.f32 1e-05, %v2245_v45  ;;  %v2240_v59 = vpop.xlane.xlu1 %2239 }
 0x8d7   : > { %2824 = vrsqrt.f32 %v2254_v61  ;;  %v2248_v2 = vmul.f32 0.03125, %v2240_v59  ;;  %v2237_v62 = vpop.xlane.xlu0 %2236 }
 0x8d8   : > { %2826 = vrsqrt.f32 %v2253_v63  ;;  %v2247_v58 = vmul.f32 0.03125, %v2237_v62 }
 0x8d9   : > { %v2256_v4 = vadd.f32 1e-05, %v2248_v2 }
 0x8da   : > { %v2255_v5 = vadd.f32 1e-05, %v2247_v58 }
 0x8db   : > { %2828 = vrsqrt.f32 %v2256_v4 }
 0x8dc   : > { %2830 = vrsqrt.f32 %v2255_v5  ;;  %v2821_v7 = vpop.eup %2820 }
 0x8dd   : > { %v2823_v6 = vpop.eup %2822  ;;  %v2268_v8 = vmul.f32 %v2821_v7, %v3306_v13 }
 0x8de   : > { %v2267_v9 = vmul.f32 %v2823_v6, %v3308_v14 }
 0x8df   : > { %2276 = vst.msk [vmem:[%s3340_s13 + $0x18] sm:$0xff] %vm483_vm1, %v2268_v8 }
 0x8e0   : > { %2275 = vst.msk [vmem:[%s3340_s13 + $0x10] sm:$0xff] %vm483_vm1, %v2267_v9 }
 0x8e1   : > { %v2825_v3 = vpop.eup %2824 }
 0x8e2   : > { %v2827_v52 = vpop.eup %2826  ;;  %v2270_v0 = vmul.f32 %v2825_v3, %v3314_v22 }
 0x8e3   : > { %v2269_v10 = vmul.f32 %v2827_v52, %v3317_v24 }
 0x8e4   : > { %2278 = vst.msk [vmem:[%s3340_s13 + $0x28] sm:$0xff] %vm483_vm1, %v2270_v0 }
 0x8e5   : > { %v2829_v11 = vpop.eup %2828  ;;  %2277 = vst.msk [vmem:[%s3340_s13 + $0x20] sm:$0xff] %vm483_vm1, %v2269_v10 }
 0x8e6   : > { %v2831_v12 = vpop.eup %2830  ;;  %v2272_v13 = vmul.f32 %v2829_v11, %v3324_v31 }
 0x8e7   : > { %v2271_v14 = vmul.f32 %v2831_v12, %v3327_v33 }
 0x8e8   : > { %2280 = vst.msk [vmem:[%s3340_s13 + $0x38] sm:$0xff] %vm483_vm1, %v2272_v13 }
 0x8e9   : > { %2279 = vst.msk [vmem:[%s3340_s13 + $0x30] sm:$0xff] %vm483_vm1, %v2271_v14 }
 0x8ea   : > { %2845 = shalt.err (!%p2842_p3)
}
 0x8eb   : > { %s2846_s30 = scalar_lea.hbm %s3364_s24, 1024  ;;  %s2850_s22 = scalar_lea.hbm %s3427_s11, 2048 }
 0x8ec   : > { %p2847_p4 = scmp.ne.s32.totalorder %s3364_s24, %s2846_s30  ;;  %p2851_p9 = scmp.lt.u32.totalorder %s3364_s24, %s3427_s11 }
 0x8ed   : > { %p2852_p10 = scmp.lt.u32.totalorder %s2850_s22, %s2846_s30  ;;  %p2854_p12 = scmp.lt.u32.totalorder %s2846_s30, %s3364_s24 }
 0x8ee   : > { %p2848_p7 = pnand %p2847_p4, %p3000_p5 }
 0x8ef   : > { %p2853_p11 = por %p2852_p10, %p2851_p9 }
 0x8f0   : > { %p2849_p8 = pneg %p2848_p7 }
 0x8f1   : > { %p2855_p13 = por %p2854_p12, %p2853_p11 }
 0x8f3   : > { %p2856_p0 = pnand %p2855_p13, %p2849_p8 }
 0x8f5   : > { %2859 = shalt.err (!%p2856_p0)
}
 0x8f6   : > { %s2900_s25 = smov 128   ;;  %s2901_s14 = smov 8  }
 0x8f7   : > { %2740 = dma.vmem_to_hbm [thread:$0]  (%p3000_p5), %s3366_s15, 1024, %s3364_s24, %s3375_s21, %s2900_s25, %s2900_s25, %s2901_s14  }
 0x8f8 PF: > { %p2746_p1 = scmp.ge.s32.totalorder %s2894_s20, 2  ;;  %s2311_s13 = sand.u32 1, %s2882_s17  }
 0x8f9   : > { %s2312_s30 = scalar_lea.sflag [#allocation3], %s2311_s13 }
 0x8fa   : > { %p2743_p2 = pnand %p2746_p1, %p3004_p6 }
 0x8fc   : > { %2877 = dma.done.wait (!%p2743_p2), %s2312_s30, 1024  }
 0x8fd   : > { %2879 = vsyncadd (!%p2743_p2), %s2312_s30, 4294966272  ;;  %p21_p3 = scmp.ge.s32.totalorder %s2987_s23, 4   ;;  %s3432_s17 = smov %s2886_s18 }
 0x8fe   : > { %s3433_s18 = smov %s2890_s19  ;;  %s3434_s19 = smov %s2998_s26 }
 0x8ff   : > { %s3435_s20 = smov %s2987_s23  ;;  %23 = sbr.rel (!%p21_p3) target bundleno = 3 (0x3), region = 108 }
 0x906   :  { %2317 = vsyncpa [#allocation3], 1 }
 0x907   :  { %2319 = vsyncpa [#allocation3 + $0x1], 1 }

</bundles_post_ra>
